<compile_context>
chip_gen: v7x
topology: tpu7x:2x2x1
jax: 0.10.0
libtpu: 0.0.40
codegen_flags: <defaults>
</compile_context>

<pallas_src>
import jax
import jax.numpy as jnp
from jax.experimental import pallas as pl
from jax.experimental.pallas import tpu as pltpu

_EPS = 1e-8

# ~2 MiB of f32 working set per input tile (intermediates are f32 regardless
# of the input dtype), i.e. a few MiB of double-buffered input DMA per step —
# measured mem-bound kernels are at the HBM roofline well below this size.
_TARGET_TILE_F32_BYTES = 2 << 20

# Below this total input size, XLA fusion beats kernel-launch + pipeline
# prologue overhead; use a pure-jnp fast path.
_SMALL_INPUT_BYTES = 128 << 10


def _round_up(x, m):
    return ((x + m - 1) // m) * m


def _vmem_limit_bytes():
    """Generation-aware VMEM limit: half the physical capacity, clamped."""
    cap = 128 << 20
    try:
        info = pltpu.get_tpu_info()
        cap = int(getattr(info, "vmem_capacity_bytes", cap) or cap)
    except Exception:
        pass
    return max(16 << 20, min(cap // 2, 64 << 20))


def _pick_block_n(n_rows, d):
    """Row-tile size: ~2 MiB of f32 per tile, >= ~8 grid steps when N allows,
    rounded to a multiple of 128 (lane-dense output + all-dtype sublane
    packing)."""
    rows_budget = max(128, _TARGET_TILE_F32_BYTES // (4 * max(d, 1)))
    rows_for_grid8 = -(-n_rows // 8)                  # ceil(N / 8)
    bn = min(int(rows_budget), max(int(rows_for_grid8), 128))
    bn = min(bn, _round_up(n_rows, 128))              # never bigger than (rounded) N
    return _round_up(bn, 128)


def _make_kernel(n_valid, block_n):
    eps2 = _EPS * _EPS

    def kernel(x_ref, y_ref, o_ref):
        # x_ref, y_ref: (block_n, D) tiles in VMEM; o_ref: (1, block_n).
        # Inputs stay in their HBM dtype (e.g. bf16) and are upcast here —
        # the cast is VPU filler; HBM bytes are the roofline.
        x = x_ref[...].astype(jnp.float32)
        y = y_ref[...].astype(jnp.float32)

        dot = jnp.sum(x * y, axis=-1, keepdims=True)   # (block_n, 1)
        xx = jnp.sum(x * x, axis=-1, keepdims=True)    # ||x||^2
        yy = jnp.sum(y * y, axis=-1, keepdims=True)    # ||y||^2

        # One EUP rsqrt instead of two sqrts + a divide; clamping the product
        # of squared norms at eps^2 == torch's max(||x||*||y||, eps).
        inv = jax.lax.rsqrt(jnp.maximum(xx * yy, eps2))
        res = (dot * inv).reshape((1, block_n))        # sublane->lane (idle XLU)

        # Mask the ragged tail explicitly: rows >= N carry undefined data from
        # the partial last block; zero them (and Pallas also drops OOB writes).
        col = jax.lax.broadcasted_iota(jnp.int32, (1, block_n), 1)
        row = pl.program_id(0) * block_n + col
        o_ref[...] = jnp.where(row < n_valid, res, 0.0).astype(o_ref.dtype)

    return kernel


def _reference(inp, target):
    x = inp.astype(jnp.float32)
    y = target.astype(jnp.float32)
    dot = jnp.sum(x * y, axis=1)
    denom = jnp.maximum(
        jnp.sqrt(jnp.sum(x * x, axis=1)) * jnp.sqrt(jnp.sum(y * y, axis=1)),
        _EPS,
    )
    return dot / denom


def cosine_feat_loss(inp, target, z_shift=False):
    """Pallas implementation of CosineFeatLoss.forward.

    `z_shift` is accepted (and ignored), matching the PyTorch module which
    never uses it.  Returns the per-row cosine similarity, shape (N,), f32."""
    assert inp.shape == target.shape
    assert inp.ndim == 2, "CosineSimilarity(dim=1) over (N, D) features"
    N, D = inp.shape
    itemsize = jnp.dtype(inp.dtype).itemsize

    # Tiny-batch fast path: fixed kernel overhead would dominate.
    if 2 * N * D * itemsize <= _SMALL_INPUT_BYTES:
        return _reference(inp, target)

    block_n = _pick_block_n(N, D)
    num_blocks = -(-N // block_n)                     # cdiv; ragged tail ok

    cost = pl.CostEstimate(
        flops=6 * N * D,
        transcendentals=N,
        bytes_accessed=2 * N * D * itemsize + 4 * N,
    )

    out2d = pl.pallas_call(
        _make_kernel(N, block_n),
        out_shape=jax.ShapeDtypeStruct((1, N), jnp.float32),
        grid_spec=pltpu.PrefetchScalarGridSpec(
            num_scalar_prefetch=0,
            grid=(num_blocks,),
            in_specs=[
                pl.BlockSpec((block_n, D), lambda i: (i, 0)),
                pl.BlockSpec((block_n, D), lambda i: (i, 0)),
            ],
            out_specs=pl.BlockSpec((1, block_n), lambda i: (0, i)),
        ),
        compiler_params=pltpu.CompilerParams(
            dimension_semantics=("parallel",),
            vmem_limit_bytes=_vmem_limit_bytes(),
        ),
        cost_estimate=cost,
    )(inp, target)

    return out2d[0]   # (N,) — same as PyTorch CosineSimilarity over dim=1


if __name__ == "__main__":
    key = jax.random.PRNGKey(0)
    k1, k2, k3, k4, k5, k6 = jax.random.split(key, 6)

    # 1) Small feature matrices consistent with the module: (N, D) = (16, 256).
    #    Goes through the tiny-batch fast path.
    N, D = 16, 256
    inp = jax.random.normal(k1, (N, D), dtype=jnp.float32)
    tgt = jax.random.normal(k2, (N, D), dtype=jnp.float32)
    out = jax.block_until_ready(cosine_feat_loss(inp, tgt))
    ref = _reference(inp, tgt)
    assert out.shape == (N,)
    assert jnp.allclose(out, ref, atol=1e-5, rtol=1e-5)

    # 2) f32, ragged N (not a multiple of the 128-row tile) — Pallas path,
    #    exercises the in-kernel tail mask and lane-dense output.
    N1, D1 = 1030, 256
    inp1 = jax.random.normal(k3, (N1, D1), dtype=jnp.float32)
    tgt1 = jax.random.normal(k4, (N1, D1), dtype=jnp.float32)
    out1 = jax.block_until_ready(cosine_feat_loss(inp1, tgt1))
    ref1 = _reference(inp1, tgt1)
    assert out1.shape == (N1,)
    assert jnp.allclose(out1, ref1, atol=1e-5, rtol=1e-5)

    # 3) bf16 inputs (half the HBM read traffic), ragged N, D not a multiple
    #    of 128 — Pallas path with in-kernel f32 upcast.
    N2, D2 = 557, 320
    inp2 = jax.random.normal(k5, (N2, D2), dtype=jnp.bfloat16)
    tgt2 = jax.random.normal(k6, (N2, D2), dtype=jnp.bfloat16)
    out2 = jax.block_until_ready(cosine_feat_loss(inp2, tgt2))
    ref2 = _reference(inp2, tgt2)
    assert out2.shape == (N2,)
    assert jnp.allclose(out2, ref2, atol=1e-4, rtol=1e-4)

    print("KERNEL_OK")
</pallas_src>

<mosaic_0001>
module attributes {stable_mosaic.version = 11 : i64} {
  func.func @kernel(%arg0: i32, %arg1: memref<256x256xf32, #tpu.memory_space<vmem>>, %arg2: memref<256x256xf32, #tpu.memory_space<vmem>>, %arg3: memref<1x256xf32, #tpu.memory_space<vmem>>) attributes {dimension_semantics = [#tpu.dimension_semantics<parallel>], iteration_bounds = array<i64: 5>, scalar_prefetch = 0 : i64, scratch_operands = 0 : i64, tpu.core_type = #tpu.core_type<tc>, window_params = [{transform_indices = @transform_0, window_bounds = array<i64: 256, 256>}, {transform_indices = @transform_1, window_bounds = array<i64: 256, 256>}, {transform_indices = @transform_2, window_bounds = array<i64: 1, 256>}]} {
    %c0 = arith.constant 0 : index
    %c0_0 = arith.constant 0 : index
    %0 = vector.load %arg1[%c0, %c0_0] : memref<256x256xf32, #tpu.memory_space<vmem>>, vector<256x256xf32>
    %c0_1 = arith.constant 0 : index
    %c0_2 = arith.constant 0 : index
    %1 = vector.load %arg2[%c0_1, %c0_2] : memref<256x256xf32, #tpu.memory_space<vmem>>, vector<256x256xf32>
    %2 = arith.mulf %0, %1 : vector<256x256xf32>
    %cst = arith.constant dense<0.000000e+00> : vector<256xf32>
    %3 = vector.multi_reduction <add>, %2, %cst [1] : vector<256x256xf32> to vector<256xf32>
    %4 = vector.shape_cast %3 : vector<256xf32> to vector<256x1xf32>
    %5 = arith.mulf %0, %0 : vector<256x256xf32>
    %cst_3 = arith.constant dense<0.000000e+00> : vector<256xf32>
    %6 = vector.multi_reduction <add>, %5, %cst_3 [1] : vector<256x256xf32> to vector<256xf32>
    %7 = vector.shape_cast %6 : vector<256xf32> to vector<256x1xf32>
    %8 = arith.mulf %1, %1 : vector<256x256xf32>
    %cst_4 = arith.constant dense<0.000000e+00> : vector<256xf32>
    %9 = vector.multi_reduction <add>, %8, %cst_4 [1] : vector<256x256xf32> to vector<256xf32>
    %10 = vector.shape_cast %9 : vector<256xf32> to vector<256x1xf32>
    %11 = arith.mulf %7, %10 : vector<256x1xf32>
    %cst_5 = arith.constant 1.000000e-16 : f32
    %12 = vector.broadcast %cst_5 : f32 to vector<256x1xf32>
    %13 = arith.maximumf %11, %12 : vector<256x1xf32>
    %14 = math.rsqrt %13 : vector<256x1xf32>
    %15 = arith.mulf %4, %14 : vector<256x1xf32>
    %16 = vector.shape_cast %15 : vector<256x1xf32> to vector<1x256xf32>
    %17 = tpu.iota {dimensions = array<i32: 1>} : vector<1x256xi32>
    %c256_i32 = arith.constant 256 : i32
    %18 = arith.muli %arg0, %c256_i32 : i32
    %19 = vector.broadcast %18 : i32 to vector<1x256xi32>
    %20 = arith.addi %19, %17 : vector<1x256xi32>
    %c1030_i32 = arith.constant 1030 : i32
    %21 = vector.broadcast %c1030_i32 : i32 to vector<1x256xi32>
    %22 = arith.cmpi slt, %20, %21 : vector<1x256xi32>
    %cst_6 = arith.constant 0.000000e+00 : f32
    %23 = vector.broadcast %cst_6 : f32 to vector<1x256xf32>
    %24 = arith.select %22, %16, %23 : vector<1x256xi1>, vector<1x256xf32>
    %c0_7 = arith.constant 0 : index
    %c0_8 = arith.constant 0 : index
    %25 = vector.load %arg3[%c0_7, %c0_8] : memref<1x256xf32, #tpu.memory_space<vmem>>, vector<1x256xf32>
    tpu.vector_store %arg3[%c0_7, %c0_8], %24 {strides = array<i32>} : memref<1x256xf32, #tpu.memory_space<vmem>>, vector<1x256xf32>,
    return
  }
  func.func @transform_0(%arg0: i32) -> (i32, i32) {
    %c0_i32 = arith.constant 0 : i32
    %c0_i32_0 = arith.constant 0 : i32
    return %arg0, %c0_i32 : i32, i32
  }
  func.func @transform_1(%arg0: i32) -> (i32, i32) {
    %c0_i32 = arith.constant 0 : i32
    %c0_i32_0 = arith.constant 0 : i32
    return %arg0, %c0_i32 : i32, i32
  }
  func.func @transform_2(%arg0: i32) -> (i32, i32) {
    %c0_i32 = arith.constant 0 : i32
    %c0_i32_0 = arith.constant 0 : i32
    return %c0_i32, %arg0 : i32, i32
  }
}

</mosaic_0001>

<bundles_post_ra>
// kernel: tpu_custom_call.1
= control target key start
LH: loop header
LB: loop body
LE: loop exit
PB: predicated region body
PF: predicated region fallthrough
CT: control target
= control target key end

     0   :  { %7 = vsyncpa [#allocation3], 0  ;;  %s2997_s0 = inlined_call_operand.hbm [shape: f32[1030,256], index: 0, kind: input, shape index: {}]   ;;  %s2998_s1 = inlined_call_operand.hbm [shape: f32[1030,256], index: 1, kind: input, shape index: {}]   ;;  %s2999_s2 = inlined_call_operand.hbm [shape: f32[1,1030], index: 2, kind: output, shape index: {}]  }
   0x1   :  { %9 = vsyncpa [#allocation3 + $0x1], 0 }
   0x2   :  { %10 = vsyncpa [#allocation6], 0 }
   0x3   :  { %12 = vsyncpa [#allocation6 + $0x1], 0 }
   0x4   :  { %13 = vsyncpa [#allocation4], 0 }
   0x5   :  { %15 = vsyncpa [#allocation4 + $0x1], 0  ;;  %s1640_s9 = smov 0   ;;  %s1642_s10 = smov 0  }
   0x6   :  { %s1644_s11 = smov 0   ;;  %s1646_s12 = smov 0  }
   0x7 LB: > { %s1661_s13 = sadd.s32 4294967295, %s1615_s12   ;;  %s1340_s14 = sadd.s32 4294967294, %s1615_s12   ;;  %s1615_s12 = sphi %s1646_s12, %s3202_s12   ;;  %s1611_s11 = sphi %s1644_s11, %s3201_s11   ;;  %s1607_s10 = sphi %s1642_s10, %s3200_s10   ;;  %s1603_s9 = sphi %s1640_s9, %s3199_s9  }
   0x8   : > { %s1665_s15 = sadd.s32 1, %s1615_s12   ;;  %s28_s16 = sadd.s32 1, %s1611_s11 }
   0x9   : > { %s25_s17 = ssub.s32 %s1615_s12, %s1665_s15  ;;  %p35_p0 = scmp.ne.s32.totalorder %s1611_s11, %s1607_s10 }
   0xa   : > { %p26_p1 = scmp.eq.s32.totalorder %s25_s17, 0  ;;  %p36_p2 = scmp.eq.s32.totalorder %s1615_s12, 0 }
   0xb   : > { %p41_p3 = scmp.ne.s32.totalorder %s1607_s10, %s1603_s9  ;;  %p42_p4 = scmp.eq.s32.totalorder %s1661_s13, 0 }
   0xc   : > { %s1677_s18 = scalar_select %p26_p1, %s1611_s11, %s28_s16  }
   0xd   : > { %p1679_p5 = por %p36_p2, %p35_p0  ;;  %p1683_p6 = por %p42_p4, %p41_p3 }
   0xe   : > { %p91_p7 = scmp.eq.s32.totalorder %s1661_s13, 4  ;;  %p97_p8 = scmp.eq.s32.totalorder %s1340_s14, 4 }
   0xf   : > { %p1342_p11 = scmp.ge.s32.totalorder %s1615_s12, 5 }
  0x10   : > { %p1688_p9 = por %p91_p7, %p35_p0  ;;  %p1692_p10 = por %p97_p8, %p41_p3 }
  0x11   : > { %113 = sbr.rel (%p1342_p11) target bundleno = 94 (0x5e), region = 16 }
  0x12   : > { %s3054_s21 = scalar_select %p1688_p9, 1, 0 }
  0x13   : > { %s3055_s22 = scalar_select %p1692_p10, 1, 0 }
  0x18   : > { %116 = sbr.rel (!%p1679_p5) target bundleno = 59 (0x3b), region = 20  ;;  %s117_s23 = sand.u32 (%p1679_p5), 1, %s1611_s11  }
  0x19   : > { %s1344_s24 = sshll.u32 (%p1679_p5), %s1615_s12, 5  ;;  %s1343_s25 = sshll.u32 (%p1679_p5), %s117_s23, 9 }
  0x1a   : > { %s123_s26 = ssub.s32 (%p1679_p5), 129, %s1344_s24  ;;  %s1704_s29 = scalar_lea.sflag (%p1679_p5), [#allocation3], %s117_s23 }
  0x1b   : > { %p124_p12 = scmp.lt.s32.totalorder (%p1679_p5), %s123_s26, 32  ;;  %s121_s30 = scalar_lea.vmem (%p1679_p5), [#allocation2], %s1343_s25 }
  0x1f   : > { %s3204_s26 = smov (!%p124_p12, %s123_s26), 32 }
  0x20   : > { %s1701_s27 = sshll.u32 %s3204_s26, 8 }
  0x21   : > { %s129_s28 = ssub.s32 8192, %s1701_s27 }
  0x22   : > { %130 = vsyncadd %s1704_s29, %s129_s28  ;;  %p1347_p13 = scmp.ne.s32.totalorder %s1701_s27, 0  ;;  %s1375_s3 = sshll.u32 %s1615_s12, 13 }
  0x23   : > { %s1712_s6 = scalar_lea.hbm %s2997_s0, %s1375_s3  ;;  %s136_s7 = sshll.u32 %s121_s30, 4  ;;  %s1714_s7 = int_to_ptr.vmem [resolvable:$true] %s136_s7 }
  0x24   : > { %s1489_s8 = scalar_lea.hbm %s1712_s6, %s1701_s27  ;;  %s1493_s17 = scalar_lea.hbm %s2997_s0, 33024 }
  0x25   : > { %p1490_p0 = scmp.ne.s32.totalorder %s1712_s6, %s1489_s8  ;;  %p1494_p3 = scmp.lt.u32.totalorder %s1712_s6, %s2997_s0 }
  0x26   : > { %p1495_p4 = scmp.lt.u32.totalorder %s1493_s17, %s1489_s8  ;;  %p1497_p8 = scmp.lt.u32.totalorder %s1489_s8, %s1712_s6 }
  0x27   : > { %p1491_p1 = pnand %p1490_p0, %p1347_p13 }
  0x28   : > { %p1496_p7 = por %p1495_p4, %p1494_p3 }
  0x29   : > { %p1492_p2 = pneg %p1491_p1 }
  0x2a   : > { %p1498_p11 = por %p1497_p8, %p1496_p7 }
  0x2c   : > { %p1499_p12 = pnand %p1498_p11, %p1492_p2 }
  0x2e   : > { %1502 = shalt.err (!%p1499_p12)
}
  0x2f   : > { %s1503_s25 = scalar_lea.vmem %s1714_s7, %s1701_s27  ;;  %s1617_s26 = smov [#allocation2]  }
  0x30   : > { %p1504_p0 = scmp.ne.s32.totalorder %s1714_s7, %s1503_s25  ;;  %s1507_s28 = sshll.u32 %s1617_s26, 4  ;;  %s1508_s28 = int_to_ptr.vmem [resolvable:$false] %s1507_s28 }
  0x31   : > { %s1509_s30 = scalar_lea.vmem %s1508_s28, 16384  ;;  %p1510_p9 = scmp.lt.s32.totalorder %s1714_s7, %s1508_s28 }
  0x32   : > { %p1505_p1 = pnand %p1504_p0, %p1347_p13  ;;  %p1511_p3 = scmp.lt.s32.totalorder %s1509_s30, %s1503_s25 }
  0x34   : > { %p1506_p10 = pneg %p1505_p1  ;;  %p1512_p4 = por %p1511_p3, %p1510_p9 }
  0x36   : > { %p1513_p7 = pnand %p1512_p4, %p1506_p10 }
  0x38   : > { %1516 = shalt.err (!%p1513_p7)
}
  0x39   : > { %s1618_s3 = smov 256   ;;  %s1619_s4 = smov 16  }
  0x3a   : > { %142 = dma.hbm_to_vmem [thread:$0]  (%p1347_p13), %s1712_s6, %s1701_s27, %s1714_s7, %s1704_s29, %s1618_s3, %s1618_s3, %s1619_s4  }
  0x3b PF: > { %145 = sbr.rel (!%p1679_p5) target bundleno = 94 (0x5e), region = 24  ;;  %s146_s5 = sand.u32 (%p1679_p5), 1, %s1611_s11  }
  0x3c   : > { %s1353_s8 = sshll.u32 (%p1679_p5), %s1615_s12, 5  ;;  %s1352_s14 = sshll.u32 (%p1679_p5), %s146_s5, 9 }
  0x3d   : > { %s152_s16 = ssub.s32 (%p1679_p5), 129, %s1353_s8  ;;  %s1748_s24 = scalar_lea.sflag (%p1679_p5), [#allocation6], %s146_s5 }
  0x3e   : > { %p153_p9 = scmp.lt.s32.totalorder (%p1679_p5), %s152_s16, 32  ;;  %s150_s27 = scalar_lea.vmem (%p1679_p5), [#allocation5], %s1352_s14 }
  0x42   : > { %s3206_s16 = smov (!%p153_p9, %s152_s16), 32 }
  0x43   : > { %s1745_s17 = sshll.u32 %s3206_s16, 8 }
  0x44   : > { %s158_s23 = ssub.s32 8192, %s1745_s17 }
  0x45   : > { %159 = vsyncadd %s1748_s24, %s158_s23  ;;  %p1356_p5 = scmp.ne.s32.totalorder %s1745_s17, 0  ;;  %s1378_s19 = sshll.u32 %s1615_s12, 13 }
  0x46   : > { %s1756_s7 = scalar_lea.hbm %s2998_s1, %s1378_s19  ;;  %s165_s25 = sshll.u32 %s150_s27, 4  ;;  %s1758_s25 = int_to_ptr.vmem [resolvable:$true] %s165_s25 }
  0x47   : > { %s1517_s26 = scalar_lea.hbm %s1756_s7, %s1745_s17  ;;  %s1521_s3 = scalar_lea.hbm %s2998_s1, 33024 }
  0x48   : > { %p1518_p10 = scmp.ne.s32.totalorder %s1756_s7, %s1517_s26  ;;  %p1522_p8 = scmp.lt.u32.totalorder %s1756_s7, %s2998_s1 }
  0x49   : > { %p1523_p11 = scmp.lt.u32.totalorder %s1521_s3, %s1517_s26  ;;  %p1525_p0 = scmp.lt.u32.totalorder %s1517_s26, %s1756_s7 }
  0x4a   : > { %p1519_p13 = pnand %p1518_p10, %p1356_p5 }
  0x4b   : > { %p1524_p12 = por %p1523_p11, %p1522_p8 }
  0x4c   : > { %p1520_p2 = pneg %p1519_p13 }
  0x4d   : > { %p1526_p1 = por %p1525_p0, %p1524_p12 }
  0x4f   : > { %p1527_p3 = pnand %p1526_p1, %p1520_p2 }
  0x51   : > { %1530 = shalt.err (!%p1527_p3)
}
  0x52   : > { %s1531_s8 = scalar_lea.vmem %s1758_s25, %s1745_s17  ;;  %s1620_s14 = smov [#allocation5]  }
  0x53   : > { %p1532_p4 = scmp.ne.s32.totalorder %s1758_s25, %s1531_s8  ;;  %s1535_s16 = sshll.u32 %s1620_s14, 4  ;;  %s1536_s16 = int_to_ptr.vmem [resolvable:$false] %s1535_s16 }
  0x54   : > { %s1537_s23 = scalar_lea.vmem %s1536_s16, 16384  ;;  %p1538_p10 = scmp.lt.s32.totalorder %s1758_s25, %s1536_s16 }
  0x55   : > { %p1533_p7 = pnand %p1532_p4, %p1356_p5  ;;  %p1539_p13 = scmp.lt.s32.totalorder %s1537_s23, %s1531_s8 }
  0x57   : > { %p1534_p9 = pneg %p1533_p7  ;;  %p1540_p8 = por %p1539_p13, %p1538_p10 }
  0x59   : > { %p1541_p11 = pnand %p1540_p8, %p1534_p9 }
  0x5b   : > { %1544 = shalt.err (!%p1541_p11)
}
  0x5c   : > { %s1621_s27 = smov 256   ;;  %s1622_s19 = smov 16  }
  0x5d   : > { %171 = dma.hbm_to_vmem [thread:$0]  (%p1356_p5), %s1756_s7, %s1745_s17, %s1758_s25, %s1748_s24, %s1621_s27, %s1621_s27, %s1622_s19  }
  0x5e PF: > { %p1361_p2 = scmp.ge.s32.totalorder %s1615_s12, 1  ;;  %p173_p12 = scmp.lt.s32.totalorder %s1615_s12, 6 }
  0x60   : > { %p174_p0 = pnand %p1361_p2, %p173_p12 }
  0x62   : > { %177 = sbr.rel (%p174_p0) target bundleno = 508 (0x1fc), region = 28 }
  0x69   : > { %s1788_s29 = sand.u32 1, %s1607_s10  }
  0x6a   : > { %s1362_s6 = sshll.u32 %s1788_s29, 9  ;;  %s180_s26 = scalar_lea.sflag [#allocation3], %s1788_s29 }
  0x6b   : > { %s1792_s28 = scalar_lea.vmem [#allocation2], %s1362_s6 }
  0x6c   : > { %1590 = dma.done.wait (%p1683_p6), %s180_s26, 8192  }
  0x6d   : > { %1592 = vsyncadd (%p1683_p6), %s180_s26, 4294959104  ;;  %s189_s17 = scalar_lea.sflag [#allocation6], %s1788_s29  ;;  %s1799_s24 = scalar_lea.vmem [#allocation5], %s1362_s6 }
  0x6e   : > { %1594 = dma.done.wait (%p1683_p6), %s189_s17, 8192  }
  0x6f   : > { %1596 = vsyncadd (%p1683_p6), %s189_s17, 4294959104  ;;  %v239_v0 = vld [vmem:[%s1792_s28 + $0x20] sm:$0xff]  ;;  %v240_v1 = vld [vmem:[%s1792_s28 + $0x28] sm:$0xff]  ;;  %vm1021_vm0 = vcmask 130112   ;;  %vm1028_vm1 = vcmask 195712   ;;  %vm1035_vm2 = vcmask 261312  }
  0x70   : > { %v1808_v2 = vld [vmem:[%s1799_s24 + $0x20] sm:$0xff]  ;;  %v1811_v3 = vld [vmem:[%s1799_s24 + $0x28] sm:$0xff]  ;;  %v527_v7 = vmul.f32 %v239_v0, %v239_v0  ;;  %v528_v8 = vmul.f32 %v240_v1, %v240_v1  ;;  %v241_v12 = vld [vmem:[%s1792_s28 + $0x30] sm:$0xff]  ;;  %vm1042_vm3 = vcmask 326912   ;;  %vm1049_vm4 = vcmask 392512   ;;  %s1365_s20 = sshll.u32 %s1661_s13, 8 }
  0x71   : > { %v367_v4 = vmul.f32 %v1808_v2, %v239_v0  ;;  %v235_v5 = vld [vmem:[%s1792_s28] sm:$0xff]  ;;  %v236_v6 = vld [vmem:[%s1792_s28 + $0x8] sm:$0xff]  ;;  %v368_v9 = vmul.f32 %v1811_v3, %v240_v1  ;;  %v242_v17 = vld [vmem:[%s1792_s28 + $0x38] sm:$0xff]  ;;  %v529_v20 = vmul.f32 %v241_v12, %v241_v12  ;;  %vm1056_vm5 = vcmask 458112   ;;  %s1364_s7 = sshll.u32 %s1788_s29, 1  ;;  %s1228_s30 = scalar_lea.sflag [#allocation4], %s1788_s29 }
  0x72   : > { %v1818_v10 = vld [vmem:[%s1799_s24] sm:$0xff]  ;;  %v1821_v11 = vld [vmem:[%s1799_s24 + $0x8] sm:$0xff]  ;;  %v523_v13 = vmul.f32 %v235_v5, %v235_v5  ;;  %v524_v14 = vmul.f32 %v236_v6, %v236_v6  ;;  %v1828_v18 = vld [vmem:[%s1799_s24 + $0x30] sm:$0xff]  ;;  %v1833_v21 = vadd.f32 %v528_v8, %v527_v7  ;;  %v530_v39 = vmul.f32 %v242_v17, %v242_v17  ;;  %s217_s25 = scalar_lea.vmem [#allocation7], %s1364_s7  ;;  %p3197_p6 = scmp.ne.s32.totalorder %s3054_s21, 0 }
  0x73   : > { %v363_v15 = vmul.f32 %v1818_v10, %v235_v5  ;;  %v364_v16 = vmul.f32 %v1821_v11, %v236_v6  ;;  %v1831_v19 = vld [vmem:[%s1799_s24 + $0x38] sm:$0xff]  ;;  %v433_v22 = vadd.f32 %v368_v9, %v367_v4  ;;  %v369_v23 = vmul.f32 %v1828_v18, %v241_v12  ;;  %v1838_v25 = vld [vmem:[%s1792_s28 + $0x10] sm:$0xff]  ;;  %v243_v38 = vld [vmem:[%s1792_s28 + $0x40] sm:$0xff]  ;;  %s1367_s3 = sshll.u32 (%p3197_p6), %s1661_s13, 1 }
  0x74   : > { %3056 = vst [vmem:[#allocation11_spill] sm:$0xff] %v1833_v21  ;;  %v370_v24 = vmul.f32 %v1831_v19, %v242_v17  ;;  %v1841_v26 = vld [vmem:[%s1792_s28 + $0x18] sm:$0xff]  ;;  %v1844_v27 = vld [vmem:[%s1799_s24 + $0x10] sm:$0xff]  ;;  %v1846_v28 = vadd.f32 %v524_v14, %v523_v13  ;;  %v244_v43 = vld [vmem:[%s1792_s28 + $0x48] sm:$0xff]  ;;  %v1880_v53 = vadd.f32 %v530_v39, %v529_v20  ;;  %v531_v60 = vmul.f32 %v243_v38, %v243_v38  ;;  %s1236_s4 = ssub.s32 (%p3197_p6), 9, %s1367_s3 }
  0x75   : > { %v427_v29 = vadd.f32 %v364_v16, %v363_v15  ;;  %v1849_v30 = vld [vmem:[%s1799_s24 + $0x18] sm:$0xff]  ;;  %v365_v31 = vmul.f32 %v1844_v27, %v1838_v25  ;;  %v245_v32 = vld [vmem:[%s1792_s28 + $0x50] sm:$0xff]  ;;  %434 = vadd.xlane.f32.xlu1 %v433_v22  ;;  %v1868_v44 = vld [vmem:[%s1799_s24 + $0x40] sm:$0xff]  ;;  %v532_v4 = vmul.f32 %v244_v43, %v244_v43  ;;  %v687_v22 = vmul.f32 %v1808_v2, %v1808_v2  ;;  %p1237_p5 = scmp.lt.s32.totalorder (%p3197_p6), %s1236_s4, 2 }
  0x76   : > { %3057 = vst [vmem:[#allocation12_spill] sm:$0xff] %v1846_v28  ;;  %v246_v33 = vld [vmem:[%s1792_s28 + $0x58] sm:$0xff]  ;;  %v436_v34 = vadd.f32 %v370_v24, %v369_v23  ;;  %v366_v35 = vmul.f32 %v1849_v30, %v1841_v26  ;;  %v1858_v36 = vld [vmem:[%s1799_s24 + $0x50] sm:$0xff]  ;;  %v533_v40 = vmul.f32 %v245_v32, %v245_v32  ;;  %v1871_v45 = vld [vmem:[%s1799_s24 + $0x48] sm:$0xff]  ;;  %v371_v48 = vmul.f32 %v1868_v44, %v243_v38 }
  0x77   : > { %v1861_v37 = vld [vmem:[%s1799_s24 + $0x58] sm:$0xff]  ;;  %428 = vadd.xlane.f32.xlu0 %v427_v29  ;;  %v373_v41 = vmul.f32 %v1858_v36, %v245_v32  ;;  %v534_v46 = vmul.f32 %v246_v33, %v246_v33  ;;  %v372_v49 = vmul.f32 %v1871_v45, %v244_v43  ;;  %v249_v50 = vld [vmem:[%s1792_s28 + $0x70] sm:$0xff]  ;;  %3058 = vst [vmem:[#allocation13_spill] sm:$0xff] %v1880_v53  ;;  %v247_v57 = vld [vmem:[%s1792_s28 + $0x60] sm:$0xff]  ;;  %vm1063_vm6 = vcmask 523712  }
  0x78   : > { %v374_v42 = vmul.f32 %v1861_v37, %v246_v33  ;;  %v430_v47 = vadd.f32 %v366_v35, %v365_v31  ;;  %v250_v51 = vld [vmem:[%s1792_s28 + $0x78] sm:$0xff]  ;;  %v1878_v52 = vld [vmem:[%s1799_s24 + $0x70] sm:$0xff]  ;;  %v248_v58 = vld [vmem:[%s1792_s28 + $0x68] sm:$0xff]  ;;  %v537_v5 = vmul.f32 %v249_v50, %v249_v50  ;;  %v535_v14 = vmul.f32 %v247_v57, %v247_v57 }
  0x79   : > { %v1883_v55 = vld [vmem:[%s1799_s24 + $0x78] sm:$0xff]  ;;  %v377_v56 = vmul.f32 %v1878_v52, %v249_v50  ;;  %v1888_v59 = vadd.f32 %v534_v46, %v533_v40  ;;  %437 = vadd.xlane.f32.xlu1 %v436_v34  ;;  %v439_v61 = vadd.f32 %v372_v49, %v371_v48  ;;  %v1892_v63 = vld [vmem:[%s1799_s24 + $0x60] sm:$0xff]  ;;  %v1895_v0 = vld [vmem:[%s1799_s24 + $0x68] sm:$0xff]  ;;  %v538_v13 = vmul.f32 %v250_v51, %v250_v51 }
  0x7a   : > { %v442_v54 = vadd.f32 %v374_v42, %v373_v41  ;;  %v378_v62 = vmul.f32 %v1883_v55, %v250_v51  ;;  %v1898_v1 = vld [vmem:[%s1792_s28 + $0x90] sm:$0xff]  ;;  %v375_v6 = vmul.f32 %v1892_v63, %v247_v57  ;;  %v376_v7 = vmul.f32 %v1895_v0, %v248_v58  ;;  %v1903_v8 = vld [vmem:[%s1792_s28 + $0x98] sm:$0xff]  ;;  %v1912_v15 = vld [vmem:[%s1792_s28 + $0x80] sm:$0xff] }
  0x7b   : > { %3059 = vst [vmem:[#allocation14_spill] sm:$0xff] %v1888_v59  ;;  %431 = vadd.xlane.f32.xlu0 %v430_v47  ;;  %v1906_v9 = vld [vmem:[%s1799_s24 + $0x90] sm:$0xff]  ;;  %v1909_v12 = vld [vmem:[%s1799_s24 + $0x98] sm:$0xff]  ;;  %v1915_v16 = vld [vmem:[%s1792_s28 + $0x88] sm:$0xff]  ;;  %v1920_v20 = vadd.f32 %v532_v4, %v531_v60  ;;  %v688_v23 = vmul.f32 %v1811_v3, %v1811_v3  ;;  %v1933_v32 = vadd.f32 %v538_v13, %v537_v5  ;;  %vm1070_vm7 = vcmask 589312  }
  0x7c   : > { %v1918_v17 = vld [vmem:[%s1799_s24 + $0x80] sm:$0xff]  ;;  %v381_v24 = vmul.f32 %v1906_v9, %v1898_v1  ;;  %v382_v29 = vmul.f32 %v1909_v12, %v1903_v8  ;;  %v1931_v31 = vld [vmem:[%s1799_s24 + $0x88] sm:$0xff]  ;;  %v536_v33 = vmul.f32 %v248_v58, %v248_v58  ;;  %v448_v2 = vadd.f32 %v378_v62, %v377_v56  ;;  %v1936_v34 = vld [vmem:[%s1792_s28 + $0xb0] sm:$0xff] }
  0x7d   : > { %3060 = vst [vmem:[#allocation15_spill] sm:$0xff] %v1920_v20  ;;  %3061 = vst [vmem:[#allocation16_spill] sm:$0xff] %v1933_v32  ;;  %443 = vadd.xlane.f32.xlu1 %v442_v54  ;;  %v445_v3 = vadd.f32 %v376_v7, %v375_v6  ;;  %v1939_v35 = vld [vmem:[%s1792_s28 + $0xb8] sm:$0xff]  ;;  %v685_v38 = vmul.f32 %v1844_v27, %v1844_v27  ;;  %v686_v39 = vmul.f32 %v1849_v30, %v1849_v30  ;;  %v1950_v42 = vld [vmem:[%s1799_s24 + $0xb0] sm:$0xff]  ;;  %vm1077_vm8 = vcmask 654912  }
  0x7e   : > { %3062 = vst [vmem:[#allocation17_spill] sm:$0xff] %v1936_v34  ;;  %3063 = vst [vmem:[#allocation18_spill] sm:$0xff] %v1939_v35  ;;  %v379_v40 = vmul.f32 %v1918_v17, %v1912_v15  ;;  %v380_v41 = vmul.f32 %v1931_v31, %v1915_v16  ;;  %v1953_v43 = vld [vmem:[%s1799_s24 + $0xb8] sm:$0xff]  ;;  %v1956_v46 = vld [vmem:[%s1792_s28 + $0xa0] sm:$0xff]  ;;  %v1958_v27 = vadd.f32 %v536_v33, %v535_v14  ;;  %vm1084_vm9 = vcmask 720512  }
  0x7f   : > { %440 = vadd.xlane.f32.xlu0 %v439_v61  ;;  %3064 = vst [vmem:[#allocation19_spill] sm:$0xff] %v1950_v42  ;;  %3065 = vst [vmem:[#allocation20_spill] sm:$0xff] %v1953_v43  ;;  %v683_v30 = vmul.f32 %v1818_v10, %v1818_v10  ;;  %v1963_v47 = vld [vmem:[%s1792_s28 + $0xa8] sm:$0xff]  ;;  %v1966_v48 = vld [vmem:[%s1799_s24 + $0xa0] sm:$0xff]  ;;  %v1971_v50 = vadd.f32 %v686_v39, %v685_v38  ;;  %v454_v51 = vadd.f32 %v382_v29, %v381_v24  ;;  %vm1091_vm10 = vcmask 786112  }
  0x80   : > { %3066 = vst [vmem:[#allocation21_spill] sm:$0xff] %v1956_v46  ;;  %3067 = vst [vmem:[#allocation22_spill] sm:$0xff] %v1958_v27  ;;  %v1969_v49 = vld [vmem:[%s1799_s24 + $0xa8] sm:$0xff]  ;;  %v1974_v54 = vld [vmem:[%s1792_s28 + $0xd0] sm:$0xff]  ;;  %v684_v57 = vmul.f32 %v1821_v11, %v1821_v11  ;;  %v1981_v10 = vadd.f32 %v688_v23, %v687_v22  ;;  %v385_v58 = vmul.f32 %v1950_v42, %v1936_v34  ;;  %vm1098_vm11 = vcmask 851712  }
  0x81   : > { %3068 = vst [vmem:[#allocation23_spill] sm:$0xff] %v1963_v47  ;;  %3069 = vst [vmem:[#allocation24_spill] sm:$0xff] %v1966_v48  ;;  %v1977_v56 = vld [vmem:[%s1792_s28 + $0xd8] sm:$0xff]  ;;  %449 = vadd.xlane.f32.xlu1 %v448_v2  ;;  %v386_v60 = vmul.f32 %v1953_v43, %v1939_v35  ;;  %v1988_v61 = vld [vmem:[%s1799_s24 + $0xd0] sm:$0xff]  ;;  %v689_v11 = vmul.f32 %v1828_v18, %v1828_v18  ;;  %v690_v5 = vmul.f32 %v1831_v19, %v1831_v19  ;;  %vm1105_vm12 = vcmask 917312  }
  0x82   : > { %3070 = vst [vmem:[#allocation25_spill] sm:$0xff] %v1969_v49  ;;  %3071 = vst [vmem:[#allocation26_spill] sm:$0xff] %v1971_v50  ;;  %v1991_v62 = vld [vmem:[%s1799_s24 + $0xd8] sm:$0xff]  ;;  %v1994_v4 = vld [vmem:[%s1792_s28 + $0xc0] sm:$0xff]  ;;  %v451_v6 = vadd.f32 %v380_v41, %v379_v40  ;;  %v383_v7 = vmul.f32 %v1966_v48, %v1956_v46  ;;  %v384_v13 = vmul.f32 %v1969_v49, %v1963_v47  ;;  %vm1112_vm13 = vcmask 982912  }
  0x83   : > { %3072 = vst [vmem:[#allocation27_spill] sm:$0xff] %v1974_v54  ;;  %3073 = vst [vmem:[#allocation28_spill] sm:$0xff] %v1977_v56  ;;  %446 = vadd.xlane.f32.xlu0 %v445_v3  ;;  %v2005_v14 = vld [vmem:[%s1792_s28 + $0xc8] sm:$0xff]  ;;  %v2008_v22 = vld [vmem:[%s1799_s24 + $0xc0] sm:$0xff]  ;;  %v2013_v23 = vadd.f32 %v684_v57, %v683_v30  ;;  %v2021_v29 = vadd.f32 %v690_v5, %v689_v11  ;;  %v389_v33 = vmul.f32 %v1988_v61, %v1974_v54  ;;  %vm1119_vm14 = vcmask 1048512  }
  0x84   : > { %3074 = vst [vmem:[#allocation29_spill] sm:$0xff] %v1981_v10  ;;  %3075 = vst [vmem:[#allocation30_spill] sm:$0xff] %v1988_v61  ;;  %v2011_v18 = vld [vmem:[%s1799_s24 + $0xc8] sm:$0xff]  ;;  %v2016_v19 = vld [vmem:[%s1792_s28 + $0xf0] sm:$0xff]  ;;  %v390_v2 = vmul.f32 %v1991_v62, %v1977_v56  ;;  %v525_v57 = vmul.f32 %v1838_v25, %v1838_v25  ;;  %v526_v11 = vmul.f32 %v1841_v26, %v1841_v26 }
  0x85   : > { %3076 = vst [vmem:[#allocation31_spill] sm:$0xff] %v1991_v62  ;;  %3077 = vst [vmem:[#allocation32_spill] sm:$0xff] %v1994_v4  ;;  %v2019_v24 = vld [vmem:[%s1799_s24 + $0xf0] sm:$0xff]  ;;  %v2028_v3 = vld [vmem:[%s1792_s28 + $0xf8] sm:$0xff]  ;;  %455 = vadd.xlane.f32.xlu1 %v454_v51  ;;  %v460_v5 = vadd.f32 %v386_v60, %v385_v58  ;;  %v388_v10 = vmul.f32 %v2011_v18, %v2005_v14  ;;  %v457_v58 = vadd.f32 %v384_v13, %v383_v7 }
  0x86   : > { %3078 = vst [vmem:[#allocation33_spill] sm:$0xff] %v2005_v14  ;;  %3079 = vst [vmem:[#allocation34_spill] sm:$0xff] %v2008_v22  ;;  %v2031_v38 = vld [vmem:[%s1799_s24 + $0xf8] sm:$0xff]  ;;  %v2034_v39 = vld [vmem:[%s1792_s28 + $0xe0] sm:$0xff]  ;;  %v466_v53 = vadd.f32 %v390_v2, %v389_v33  ;;  %v2097_v62 = vadd.f32 %v526_v11, %v525_v57  ;;  %v2101_v61 = vmul.f32 %v1868_v44, %v1868_v44 }
  0x87   : > { %3080 = vst [vmem:[#allocation35_spill] sm:$0xff] %v2011_v18  ;;  %3081 = vst [vmem:[#allocation36_spill] sm:$0xff] %v2013_v23  ;;  %v2037_v40 = vld [vmem:[%s1792_s28 + $0xe8] sm:$0xff]  ;;  %v2040_v41 = vld [vmem:[%s1799_s24 + $0xe0] sm:$0xff]  ;;  %452 = vadd.xlane.f32.xlu0 %v451_v6  ;;  %v393_v6 = vmul.f32 %v2019_v24, %v2016_v19  ;;  %v394_v2 = vmul.f32 %v2031_v38, %v2028_v3  ;;  %v2179_v18 = vmul.f32 %v1858_v36, %v1858_v36 }
  0x88   : > { %3082 = vst [vmem:[#allocation37_spill] sm:$0xff] %v2016_v19  ;;  %3083 = vst [vmem:[#allocation38_spill] sm:$0xff] %v2019_v24  ;;  %v2043_v30 = vld [vmem:[%s1799_s24 + $0xe8] sm:$0xff]  ;;  %v2054_v23 = vld [vmem:[%s1792_s28 + $0x110] sm:$0xff]  ;;  %v391_v24 = vmul.f32 %v2040_v41, %v2034_v39 }
  0x89   : > { %3084 = vst [vmem:[#allocation39_spill] sm:$0xff] %v2021_v29  ;;  %3085 = vst [vmem:[#allocation40_spill] sm:$0xff] %v2028_v3  ;;  %v387_v29 = vmul.f32 %v2008_v22, %v1994_v4  ;;  %v2057_v50 = vld [vmem:[%s1792_s28 + $0x118] sm:$0xff]  ;;  %v2060_v25 = vld [vmem:[%s1799_s24 + $0x110] sm:$0xff]  ;;  %461 = vadd.xlane.f32.xlu1 %v460_v5  ;;  %v392_v19 = vmul.f32 %v2043_v30, %v2037_v40 }
  0x8a   : > { %3086 = vst [vmem:[#allocation41_spill] sm:$0xff] %v2031_v38  ;;  %3087 = vst [vmem:[#allocation42_spill] sm:$0xff] %v2034_v39  ;;  %v2063_v26 = vld [vmem:[%s1799_s24 + $0x118] sm:$0xff]  ;;  %v2066_v51 = vld [vmem:[%s1792_s28 + $0x100] sm:$0xff] }
  0x8b   : > { %3088 = vst [vmem:[#allocation43_spill] sm:$0xff] %v2037_v40  ;;  %3089 = vst [vmem:[#allocation44_spill] sm:$0xff] %v2040_v41  ;;  %v2069_v60 = vld [vmem:[%s1792_s28 + $0x108] sm:$0xff]  ;;  %v2072_v27 = vld [vmem:[%s1799_s24 + $0x100] sm:$0xff]  ;;  %v463_v33 = vadd.f32 %v388_v10, %v387_v29  ;;  %458 = vadd.xlane.f32.xlu0 %v457_v58  ;;  %v397_v10 = vmul.f32 %v2060_v25, %v2054_v23  ;;  %v398_v29 = vmul.f32 %v2063_v26, %v2057_v50 }
  0x8c   : > { %3090 = vst [vmem:[#allocation45_spill] sm:$0xff] %v2043_v30  ;;  %3091 = vst [vmem:[#allocation46_spill] sm:$0xff] %v2054_v23  ;;  %v2075_v32 = vld [vmem:[%s1799_s24 + $0x108] sm:$0xff]  ;;  %v2078_v20 = vld [vmem:[%s1792_s28 + $0x130] sm:$0xff]  ;;  %v395_v5 = vmul.f32 %v2072_v27, %v2066_v51  ;;  %v472_v30 = vadd.f32 %v394_v2, %v393_v6  ;;  %v469_v41 = vadd.f32 %v392_v19, %v391_v24 }
  0x8d   : > { %3092 = vst [vmem:[#allocation47_spill] sm:$0xff] %v2057_v50  ;;  %3093 = vst [vmem:[#allocation48_spill] sm:$0xff] %v2060_v25  ;;  %v2081_v59 = vld [vmem:[%s1792_s28 + $0x138] sm:$0xff]  ;;  %v2084_v21 = vld [vmem:[%s1799_s24 + $0x130] sm:$0xff]  ;;  %v396_v38 = vmul.f32 %v2075_v32, %v2069_v60  ;;  %467 = vadd.xlane.f32.xlu1 %v466_v53 }
  0x8e   : > { %3094 = vst [vmem:[#allocation49_spill] sm:$0xff] %v2063_v26  ;;  %3095 = vst [vmem:[#allocation50_spill] sm:$0xff] %v2066_v51  ;;  %v2089_v7 = vld [vmem:[%s1799_s24 + $0x138] sm:$0xff]  ;;  %v2092_v13 = vld [vmem:[%s1792_s28 + $0x120] sm:$0xff]  ;;  %v401_v25 = vmul.f32 %v2084_v21, %v2078_v20  ;;  %v721_v42 = vmul.f32 %v2084_v21, %v2084_v21 }
  0x8f   : > { %3096 = vst [vmem:[#allocation51_spill] sm:$0xff] %v2069_v60  ;;  %3097 = vst [vmem:[#allocation52_spill] sm:$0xff] %v2072_v27  ;;  %v2095_v28 = vld [vmem:[%s1792_s28 + $0x128] sm:$0xff]  ;;  %v2110_v57 = vld [vmem:[%s1799_s24 + $0x120] sm:$0xff]  ;;  %v402_v26 = vmul.f32 %v2089_v7, %v2081_v59  ;;  %464 = vadd.xlane.f32.xlu0 %v463_v33  ;;  %v475_v53 = vadd.f32 %v396_v38, %v395_v5  ;;  %v722_v34 = vmul.f32 %v2089_v7, %v2089_v7 }
  0x90   : > { %3098 = vst [vmem:[#allocation53_spill] sm:$0xff] %v2075_v32  ;;  %3099 = vst [vmem:[#allocation54_spill] sm:$0xff] %v2078_v20  ;;  %v2113_v11 = vld [vmem:[%s1799_s24 + $0x128] sm:$0xff]  ;;  %v2116_v44 = vld [vmem:[%s1792_s28 + $0x150] sm:$0xff]  ;;  %v399_v27 = vmul.f32 %v2110_v57, %v2092_v13 }
  0x91   : > { %3100 = vst [vmem:[#allocation55_spill] sm:$0xff] %v2081_v59  ;;  %3101 = vst [vmem:[#allocation56_spill] sm:$0xff] %v2092_v13  ;;  %v2127_v3 = vld [vmem:[%s1792_s28 + $0x158] sm:$0xff]  ;;  %v400_v32 = vmul.f32 %v2113_v11, %v2095_v28  ;;  %v275_v60 = vld [vmem:[%s1792_s28 + $0x140] sm:$0xff]  ;;  %v2194_v36 = vadd.f32 %v402_v26, %v401_v25  ;;  %473 = vadd.xlane.f32.xlu1 %v472_v30  ;;  %v2276_v46 = vadd.f32 %v722_v34, %v721_v42 }
  0x92   : > { %3102 = vst [vmem:[#allocation57_spill] sm:$0xff] %v2095_v28  ;;  %3103 = vst [vmem:[#allocation58_spill] sm:$0xff] %v2097_v62  ;;  %v2130_v62 = vld [vmem:[%s1799_s24 + $0x150] sm:$0xff]  ;;  %v2133_v58 = vld [vmem:[%s1799_s24 + $0x158] sm:$0xff]  ;;  %v692_v28 = vmul.f32 %v1871_v45, %v1871_v45  ;;  %v478_v45 = vadd.f32 %v398_v29, %v397_v10  ;;  %v565_v34 = vmul.f32 %v2116_v44, %v2116_v44 }
  0x93   : > { %3104 = vst [vmem:[#allocation59_spill] sm:$0xff] %v2110_v57  ;;  %3105 = vst [vmem:[#allocation60_spill] sm:$0xff] %v2113_v11  ;;  %v2145_v51 = vld [vmem:[%s1792_s28 + $0x148] sm:$0xff]  ;;  %v2148_v50 = vld [vmem:[%s1799_s24 + $0x140] sm:$0xff]  ;;  %v405_v20 = vmul.f32 %v2130_v62, %v2116_v44  ;;  %v406_v59 = vmul.f32 %v2133_v58, %v2127_v3  ;;  %v2196_v33 = vadd.f32 %v400_v32, %v399_v27  ;;  %470 = vadd.xlane.f32.xlu0 %v469_v41 }
  0x94   : > { %v2155_v23 = vld [vmem:[%s1799_s24 + $0x148] sm:$0xff]  ;;  %v403_v57 = vmul.f32 %v2148_v50, %v275_v60  ;;  %v2159_v13 = vld [vmem:[%s1792_s28 + $0x170] sm:$0xff]  ;;  %v2162_v11 = vld [vmem:[%s1792_s28 + $0x178] sm:$0xff]  ;;  %v2244_v21 = vadd.f32 %v692_v28, %v2101_v61  ;;  %v563_v28 = vmul.f32 %v275_v60, %v275_v60  ;;  %3112 = vst [vmem:[#allocation67_spill] sm:$0xff] %v2276_v46  ;;  %v723_v44 = vmul.f32 %v2148_v50, %v2148_v50 }
  0x95   : > { %v404_v40 = vmul.f32 %v2155_v23, %v2145_v51  ;;  %v2169_v39 = vld [vmem:[%s1799_s24 + $0x170] sm:$0xff]  ;;  %v2172_v56 = vld [vmem:[%s1799_s24 + $0x178] sm:$0xff]  ;;  %v2175_v54 = vld [vmem:[%s1792_s28 + $0x160] sm:$0xff]  ;;  %v2211_v4 = vadd.f32 %v406_v59, %v405_v20  ;;  %479 = vadd.xlane.f32.xlu1 %v478_v45  ;;  %v724_v50 = vmul.f32 %v2155_v23, %v2155_v23 }
  0x96   : > { %v409_v19 = vmul.f32 %v2169_v39, %v2159_v13  ;;  %v410_v24 = vmul.f32 %v2172_v56, %v2162_v11  ;;  %v2186_v6 = vld [vmem:[%s1792_s28 + $0x168] sm:$0xff]  ;;  %v2189_v2 = vld [vmem:[%s1799_s24 + $0x160] sm:$0xff]  ;;  %v2203_v29 = vld [vmem:[%s1792_s28 + $0x190] sm:$0xff]  ;;  %3107 = vst [vmem:[#allocation62_spill] sm:$0xff] %v2244_v21 }
  0x97   : > { %v2192_v22 = vld [vmem:[%s1799_s24 + $0x168] sm:$0xff]  ;;  %v407_v38 = vmul.f32 %v2189_v2, %v2175_v54  ;;  %v2206_v5 = vld [vmem:[%s1792_s28 + $0x198] sm:$0xff]  ;;  %v2209_v14 = vld [vmem:[%s1799_s24 + $0x190] sm:$0xff]  ;;  %v2213_v25 = vadd.f32 %v404_v40, %v403_v57  ;;  %476 = vadd.xlane.f32.xlu0 %v475_v53 }
  0x98   : > { %v408_v10 = vmul.f32 %v2192_v22, %v2186_v6  ;;  %v2216_v32 = vld [vmem:[%s1799_s24 + $0x198] sm:$0xff]  ;;  %v413_v27 = vmul.f32 %v2209_v14, %v2203_v29  ;;  %v2221_v26 = vld [vmem:[%s1792_s28 + $0x180] sm:$0xff]  ;;  %v2224_v43 = vld [vmem:[%s1792_s28 + $0x188] sm:$0xff]  ;;  %v2228_v59 = vadd.f32 %v410_v24, %v409_v19 }
  0x99   : > { %v414_v20 = vmul.f32 %v2216_v32, %v2206_v5  ;;  %v2233_v40 = vld [vmem:[%s1799_s24 + $0x180] sm:$0xff]  ;;  %v2236_v57 = vld [vmem:[%s1799_s24 + $0x188] sm:$0xff]  ;;  %v2239_v35 = vld [vmem:[%s1792_s28 + $0x1b0] sm:$0xff]  ;;  %485 = vadd.xlane.f32.xlu1 %v2194_v36  ;;  %v695_v36 = vmul.f32 %v1892_v63, %v1892_v63  ;;  %v568_v63 = vmul.f32 %v2186_v6, %v2186_v6 }
  0x9a   : > { %3106 = vst [vmem:[#allocation61_spill] sm:$0xff] %v2239_v35  ;;  %v2246_v30 = vadd.f32 %v408_v10, %v407_v38  ;;  %v411_v19 = vmul.f32 %v2233_v40, %v2221_v26  ;;  %v412_v24 = vmul.f32 %v2236_v57, %v2224_v43  ;;  %v2253_v49 = vld [vmem:[%s1792_s28 + $0x1b8] sm:$0xff]  ;;  %v2256_v48 = vld [vmem:[%s1799_s24 + $0x1b0] sm:$0xff]  ;;  %v2268_v10 = vld [vmem:[%s1792_s28 + $0x1a0] sm:$0xff] }
  0x9b   : > { %3108 = vst [vmem:[#allocation63_spill] sm:$0xff] %v2253_v49  ;;  %3109 = vst [vmem:[#allocation64_spill] sm:$0xff] %v2256_v48  ;;  %v2259_v7 = vld [vmem:[%s1799_s24 + $0x1b8] sm:$0xff]  ;;  %v2261_v61 = vadd.f32 %v414_v20, %v413_v27  ;;  %v417_v41 = vmul.f32 %v2256_v48, %v2239_v35  ;;  %v2271_v21 = vld [vmem:[%s1792_s28 + $0x1a8] sm:$0xff]  ;;  %482 = vadd.xlane.f32.xlu0 %v2196_v33  ;;  %v567_v33 = vmul.f32 %v2175_v54, %v2175_v54 }
  0x9c   : > { %3110 = vst [vmem:[#allocation65_spill] sm:$0xff] %v2259_v7  ;;  %v418_v38 = vmul.f32 %v2259_v7, %v2253_v49  ;;  %v2274_v47 = vld [vmem:[%s1799_s24 + $0x1a0] sm:$0xff]  ;;  %v2278_v60 = vadd.f32 %v412_v24, %v411_v19  ;;  %v2281_v27 = vld [vmem:[%s1799_s24 + $0x1a8] sm:$0xff]  ;;  %v2286_v48 = vld [vmem:[%s1792_s28 + $0x1d0] sm:$0xff]  ;;  %v564_v49 = vmul.f32 %v2145_v51, %v2145_v51  ;;  %v566_v51 = vmul.f32 %v2127_v3, %v2127_v3 }
  0x9d   : > { %3111 = vst [vmem:[#allocation66_spill] sm:$0xff] %v2274_v47  ;;  %3113 = vst [vmem:[#allocation68_spill] sm:$0xff] %v2281_v27  ;;  %v415_v20 = vmul.f32 %v2274_v47, %v2268_v10  ;;  %v2289_v7 = vld [vmem:[%s1792_s28 + $0x1d8] sm:$0xff]  ;;  %v416_v19 = vmul.f32 %v2281_v27, %v2271_v21  ;;  %v2300_v24 = vld [vmem:[%s1799_s24 + $0x1d0] sm:$0xff]  ;;  %491 = vadd.xlane.f32.xlu1 %v2211_v4  ;;  %v728_v54 = vmul.f32 %v2192_v22, %v2192_v22 }
  0x9e   : > { %3114 = vst [vmem:[#allocation69_spill] sm:$0xff] %v2286_v48  ;;  %3115 = vst [vmem:[#allocation70_spill] sm:$0xff] %v2289_v7  ;;  %v2295_v42 = vadd.f32 %v418_v38, %v417_v41  ;;  %v2303_v46 = vld [vmem:[%s1799_s24 + $0x1d8] sm:$0xff]  ;;  %v2306_v35 = vld [vmem:[%s1792_s28 + $0x1c0] sm:$0xff]  ;;  %v421_v45 = vmul.f32 %v2300_v24, %v2286_v48  ;;  %v2325_v3 = vadd.f32 %v564_v49, %v563_v28 }
  0x9f   : > { %3117 = vst [vmem:[#allocation72_spill] sm:$0xff] %v2300_v24  ;;  %3118 = vst [vmem:[#allocation73_spill] sm:$0xff] %v2303_v46  ;;  %v422_v41 = vmul.f32 %v2303_v46, %v2289_v7  ;;  %v2317_v38 = vld [vmem:[%s1792_s28 + $0x1c8] sm:$0xff]  ;;  %v2329_v53 = vadd.f32 %v416_v19, %v415_v20  ;;  %v2336_v7 = vld [vmem:[%s1792_s28 + $0x1f0] sm:$0xff]  ;;  %v2344_v49 = vadd.f32 %v566_v51, %v565_v34  ;;  %488 = vadd.xlane.f32.xlu0 %v2213_v25 }
  0xa0   : > { %3116 = vst [vmem:[#allocation71_spill] sm:$0xff] %v2295_v42  ;;  %v2320_v42 = vld [vmem:[%s1799_s24 + $0x1c0] sm:$0xff]  ;;  %v2323_v27 = vld [vmem:[%s1799_s24 + $0x1c8] sm:$0xff]  ;;  %3121 = vst [vmem:[#allocation76_spill] sm:$0xff] %v2325_v3  ;;  %v2414_v6 = vadd.f32 %v568_v63, %v567_v33  ;;  %v697_v4 = vmul.f32 %v1878_v52, %v1878_v52  ;;  %v571_v22 = vmul.f32 %v2221_v26, %v2221_v26 }
  0xa1   : > { %3119 = vst [vmem:[#allocation74_spill] sm:$0xff] %v2320_v42  ;;  %3120 = vst [vmem:[#allocation75_spill] sm:$0xff] %v2323_v27  ;;  %v419_v24 = vmul.f32 %v2320_v42, %v2306_v35  ;;  %v420_v46 = vmul.f32 %v2323_v27, %v2317_v38  ;;  %v2339_v48 = vld [vmem:[%s1792_s28 + $0x1f8] sm:$0xff]  ;;  %v2342_v47 = vld [vmem:[%s1799_s24 + $0x1f0] sm:$0xff]  ;;  %v2346_v28 = vadd.f32 %v422_v41, %v421_v45  ;;  %497 = vadd.xlane.f32.xlu1 %v2228_v59 }
  0xa2   : > { %3122 = vst [vmem:[#allocation77_spill] sm:$0xff] %v2344_v49  ;;  %v2349_v23 = vld [vmem:[%s1799_s24 + $0x1f8] sm:$0xff]  ;;  %v425_v20 = vmul.f32 %v2342_v47, %v2336_v7  ;;  %v2354_v19 = vld [vmem:[%s1792_s28 + $0x1e0] sm:$0xff]  ;;  %v2357_v3 = vld [vmem:[%s1792_s28 + $0x1e8] sm:$0xff]  ;;  %v2359_v27 = vadd.f32 %v724_v50, %v723_v44  ;;  %v725_v42 = vmul.f32 %v2130_v62, %v2130_v62  ;;  %v726_v49 = vmul.f32 %v2133_v58, %v2133_v58 }
  0xa3   : > { %3123 = vst [vmem:[#allocation78_spill] sm:$0xff] %v2349_v23  ;;  %v2364_v34 = vadd.f32 %v420_v46, %v419_v24  ;;  %v426_v51 = vmul.f32 %v2349_v23, %v2339_v48  ;;  %v2369_v45 = vld [vmem:[%s1799_s24 + $0x1e0] sm:$0xff]  ;;  %v2372_v41 = vld [vmem:[%s1799_s24 + $0x1e8] sm:$0xff]  ;;  %v694_v44 = vmul.f32 %v1861_v37, %v1861_v37  ;;  %v696_v24 = vmul.f32 %v1895_v0, %v1895_v0 }
  0xa4   : > { %3124 = vst [vmem:[#allocation79_spill] sm:$0xff] %v2359_v27  ;;  %v423_v62 = vmul.f32 %v2369_v45, %v2354_v19  ;;  %v424_v46 = vmul.f32 %v2372_v41, %v2357_v3  ;;  %v2389_v58 = vadd.f32 %v726_v49, %v725_v42  ;;  %v569_v0 = vmul.f32 %v2159_v13, %v2159_v13  ;;  %v3126_v33 = vld [vmem:[#allocation23_spill] sm:$0xff]  ;;  %v3127_v63 = vld [vmem:[#allocation66_spill] sm:$0xff] }
  0xa5   : > { %v2387_v50 = vadd.f32 %v426_v51, %v425_v20  ;;  %v2392_v37 = vadd.f32 %v694_v44, %v2179_v18  ;;  %v2398_v23 = vadd.f32 %v696_v24, %v695_v36  ;;  %v570_v42 = vmul.f32 %v2162_v11, %v2162_v11  ;;  %494 = vadd.xlane.f32.xlu0 %v2246_v30 }
  0xa6   : > { %v2396_v27 = vadd.f32 %v424_v46, %v423_v62  ;;  %v727_v18 = vmul.f32 %v2189_v2, %v2189_v2  ;;  %v729_v49 = vmul.f32 %v2169_v39, %v2169_v39  ;;  %v730_v13 = vmul.f32 %v2172_v56, %v2172_v56  ;;  %503 = vadd.xlane.f32.xlu1 %v2261_v61 }
  0xa7   : > { %v698_v11 = vmul.f32 %v1883_v55, %v1883_v55  ;;  %v2422_v2 = vadd.f32 %v570_v42, %v569_v0  ;;  %v572_v39 = vmul.f32 %v2224_v43, %v2224_v43  ;;  %v539_v52 = vmul.f32 %v1912_v15, %v1912_v15 }
  0xa8   : > { %v2424_v20 = vadd.f32 %v728_v54, %v727_v18  ;;  %v2430_v25 = vadd.f32 %v730_v13, %v729_v49  ;;  %v540_v55 = vmul.f32 %v1915_v16, %v1915_v16  ;;  %v731_v26 = vmul.f32 %v2233_v40, %v2233_v40  ;;  %v3129_v18 = vld [vmem:[#allocation24_spill] sm:$0xff]  ;;  %v3130_v49 = vld [vmem:[#allocation25_spill] sm:$0xff] }
  0xa9   : > { %v2432_v51 = vadd.f32 %v698_v11, %v697_v4  ;;  %v2439_v56 = vadd.f32 %v572_v39, %v571_v22  ;;  %v732_v43 = vmul.f32 %v2236_v57, %v2236_v57  ;;  %v699_v44 = vmul.f32 %v1918_v17, %v1918_v17  ;;  %500 = vadd.xlane.f32.xlu0 %v2278_v60  ;;  %v3131_v4 = vld [vmem:[#allocation61_spill] sm:$0xff]  ;;  %v3132_v22 = vld [vmem:[#allocation63_spill] sm:$0xff] }
  0xaa   : > { %v2448_v62 = vadd.f32 %v540_v55, %v539_v52  ;;  %v700_v15 = vmul.f32 %v1931_v31, %v1931_v31  ;;  %v573_v16 = vmul.f32 %v2203_v29, %v2203_v29  ;;  %v574_v59 = vmul.f32 %v2206_v5, %v2206_v5  ;;  %v3133_v52 = vld [vmem:[#allocation71_spill] sm:$0xff] }
  0xab   : > { %v2456_v40 = vadd.f32 %v732_v43, %v731_v26  ;;  %v541_v57 = vmul.f32 %v1898_v1, %v1898_v1  ;;  %v542_v17 = vmul.f32 %v1903_v8, %v1903_v8  ;;  %v733_v30 = vmul.f32 %v2209_v14, %v2209_v14  ;;  %509 = vadd.xlane.f32.xlu1 %v3133_v52  ;;  %v3134_v26 = vld [vmem:[#allocation17_spill] sm:$0xff] }
  0xac   : > { %v2464_v46 = vadd.f32 %v700_v15, %v699_v44  ;;  %v2466_v31 = vadd.f32 %v574_v59, %v573_v16  ;;  %v734_v29 = vmul.f32 %v2216_v32, %v2216_v32  ;;  %v701_v5 = vmul.f32 %v1906_v9, %v1906_v9  ;;  %v3125_v32 = vld [vmem:[#allocation21_spill] sm:$0xff]  ;;  %v3135_v44 = vld [vmem:[#allocation18_spill] sm:$0xff]  ;;  %v3136_v16 = vld [vmem:[#allocation64_spill] sm:$0xff] }
  0xad   : > { %v2473_v36 = vadd.f32 %v542_v17, %v541_v57  ;;  %v702_v1 = vmul.f32 %v1909_v12, %v1909_v12  ;;  %v575_v8 = vmul.f32 %v2268_v10, %v2268_v10  ;;  %v576_v14 = vmul.f32 %v2271_v21, %v2271_v21  ;;  %v3128_v10 = vld [vmem:[#allocation68_spill] sm:$0xff]  ;;  %506 = vadd.xlane.f32.xlu0 %v2329_v53  ;;  %v3146_v52 = vld [vmem:[#allocation69_spill] sm:$0xff] }
  0xae   : > { %v2482_v24 = vadd.f32 %v734_v29, %v733_v30  ;;  %v543_v9 = vmul.f32 %v3125_v32, %v3125_v32  ;;  %v544_v61 = vmul.f32 %v3126_v33, %v3126_v33  ;;  %v735_v0 = vmul.f32 %v3127_v63, %v3127_v63  ;;  %v3137_v30 = vld [vmem:[#allocation65_spill] sm:$0xff] }
  0xaf   : > { %v2490_v12 = vadd.f32 %v702_v1, %v701_v5  ;;  %v2492_v42 = vadd.f32 %v576_v14, %v575_v8  ;;  %v736_v21 = vmul.f32 %v3128_v10, %v3128_v10  ;;  %v703_v60 = vmul.f32 %v3129_v18, %v3129_v18  ;;  %v3138_v5 = vld [vmem:[#allocation19_spill] sm:$0xff]  ;;  %v3139_v14 = vld [vmem:[#allocation20_spill] sm:$0xff]  ;;  %515 = vadd.xlane.f32.xlu1 %v2346_v28 }
  0xb0   : > { %v2498_v54 = vadd.f32 %v544_v61, %v543_v9  ;;  %v704_v13 = vmul.f32 %v3130_v49, %v3130_v49  ;;  %v577_v11 = vmul.f32 %v3131_v4, %v3131_v4  ;;  %v578_v39 = vmul.f32 %v3132_v22, %v3132_v22  ;;  %v3140_v61 = vld [vmem:[#allocation32_spill] sm:$0xff]  ;;  %v3145_v22 = vld [vmem:[#allocation35_spill] sm:$0xff] }
  0xb1   : > { %v2507_v55 = vadd.f32 %v736_v21, %v735_v0  ;;  %v545_v43 = vmul.f32 %v3134_v26, %v3134_v26  ;;  %v546_v15 = vmul.f32 %v3135_v44, %v3135_v44  ;;  %v737_v59 = vmul.f32 %v3136_v16, %v3136_v16  ;;  %v3141_v0 = vld [vmem:[#allocation33_spill] sm:$0xff]  ;;  %v3142_v21 = vld [vmem:[#allocation74_spill] sm:$0xff]  ;;  %512 = vadd.xlane.f32.xlu0 %v2364_v34  ;;  %v3150_v34 = vld [vmem:[#allocation72_spill] sm:$0xff] }
  0xb2   : > { %v2516_v57 = vadd.f32 %v704_v13, %v703_v60  ;;  %v2518_v17 = vadd.f32 %v578_v39, %v577_v11  ;;  %v738_v29 = vmul.f32 %v3137_v30, %v3137_v30  ;;  %v705_v1 = vmul.f32 %v3138_v5, %v3138_v5  ;;  %v3144_v13 = vld [vmem:[#allocation34_spill] sm:$0xff] }
  0xb3   : > { %v2524_v8 = vadd.f32 %v546_v15, %v545_v43  ;;  %v706_v32 = vmul.f32 %v3139_v14, %v3139_v14  ;;  %v579_v9 = vmul.f32 %v2306_v35, %v2306_v35  ;;  %v580_v53 = vmul.f32 %v2317_v38, %v2317_v38  ;;  %v3143_v35 = vld [vmem:[#allocation75_spill] sm:$0xff]  ;;  %v3147_v26 = vld [vmem:[#allocation70_spill] sm:$0xff]  ;;  %v3151_v14 = vld [vmem:[#allocation73_spill] sm:$0xff]  ;;  %521 = vadd.xlane.f32.xlu1 %v2387_v50 }
  0xb4   : > { %v2532_v33 = vadd.f32 %v738_v29, %v737_v59  ;;  %v547_v63 = vmul.f32 %v3140_v61, %v3140_v61  ;;  %v548_v10 = vmul.f32 %v3141_v0, %v3141_v0  ;;  %v739_v18 = vmul.f32 %v3142_v21, %v3142_v21  ;;  %v3148_v15 = vld [vmem:[#allocation27_spill] sm:$0xff]  ;;  %v3149_v59 = vld [vmem:[#allocation28_spill] sm:$0xff] }
  0xb5   : > { %v2541_v60 = vadd.f32 %v706_v32, %v705_v1  ;;  %v2543_v49 = vadd.f32 %v580_v53, %v579_v9  ;;  %v740_v38 = vmul.f32 %v3143_v35, %v3143_v35  ;;  %v707_v4 = vmul.f32 %v3144_v13, %v3144_v13  ;;  %v3152_v9 = vld [vmem:[#allocation30_spill] sm:$0xff]  ;;  %518 = vadd.xlane.f32.xlu0 %v2396_v27  ;;  %v3155_v13 = vld [vmem:[#allocation43_spill] sm:$0xff] }
  0xb6   : > { %v2550_v11 = vadd.f32 %v548_v10, %v547_v63  ;;  %v708_v39 = vmul.f32 %v3145_v22, %v3145_v22  ;;  %v581_v28 = vmul.f32 %v3146_v52, %v3146_v52  ;;  %v582_v43 = vmul.f32 %v3147_v26, %v3147_v26  ;;  %v3153_v63 = vld [vmem:[#allocation31_spill] sm:$0xff]  ;;  %v3154_v35 = vld [vmem:[#allocation42_spill] sm:$0xff] }
  0xb7   : > { %v2558_v44 = vadd.f32 %v740_v38, %v739_v18  ;;  %v549_v16 = vmul.f32 %v3148_v15, %v3148_v15  ;;  %v550_v30 = vmul.f32 %v3149_v59, %v3149_v59  ;;  %v741_v29 = vmul.f32 %v3150_v34, %v3150_v34  ;;  %v3158_v15 = vld [vmem:[#allocation58_spill] sm:$0xff]  ;;  %v3159_v59 = vld [vmem:[#allocation37_spill] sm:$0xff] }
  0xb8   : > { %v2566_v5 = vadd.f32 %v708_v39, %v707_v4  ;;  %v2568_v1 = vadd.f32 %v582_v43, %v581_v28  ;;  %v742_v32 = vmul.f32 %v3151_v14, %v3151_v14  ;;  %v709_v53 = vmul.f32 %v3152_v9, %v3152_v9  ;;  %v3157_v28 = vld [vmem:[#allocation45_spill] sm:$0xff]  ;;  %591 = vadd.xlane.f32.xlu1 %v3158_v15  ;;  %v3161_v14 = vld [vmem:[#allocation12_spill] sm:$0xff] }
  0xb9   : > { %v2575_v61 = vadd.f32 %v550_v30, %v549_v16  ;;  %v710_v0 = vmul.f32 %v3153_v63, %v3153_v63  ;;  %v583_v10 = vmul.f32 %v2354_v19, %v2354_v19  ;;  %v584_v21 = vmul.f32 %v2357_v3, %v2357_v3  ;;  %v3156_v19 = vld [vmem:[#allocation44_spill] sm:$0xff]  ;;  %588 = vadd.xlane.f32.xlu0 %v3161_v14 }
  0xba   : > { %v2584_v18 = vadd.f32 %v742_v32, %v741_v29  ;;  %v551_v38 = vmul.f32 %v3154_v35, %v3154_v35  ;;  %v552_v50 = vmul.f32 %v3155_v13, %v3155_v13  ;;  %v743_v4 = vmul.f32 %v2369_v45, %v2369_v45  ;;  %v3160_v30 = vld [vmem:[#allocation40_spill] sm:$0xff]  ;;  %v3166_v13 = vld [vmem:[#allocation11_spill] sm:$0xff] }
  0xbb   : > { %v2592_v22 = vadd.f32 %v710_v0, %v709_v53  ;;  %v2594_v39 = vadd.f32 %v584_v21, %v583_v10  ;;  %v744_v3 = vmul.f32 %v2372_v41, %v2372_v41  ;;  %v711_v27 = vmul.f32 %v3156_v19, %v3156_v19  ;;  %v3163_v53 = vld [vmem:[#allocation38_spill] sm:$0xff]  ;;  %v3164_v10 = vld [vmem:[#allocation41_spill] sm:$0xff]  ;;  %v3169_v19 = vld [vmem:[#allocation47_spill] sm:$0xff] }
  0xbc   : > { %v2600_v52 = vadd.f32 %v552_v50, %v551_v38  ;;  %v712_v26 = vmul.f32 %v3157_v28, %v3157_v28  ;;  %v585_v43 = vmul.f32 %v2336_v7, %v2336_v7  ;;  %v586_v45 = vmul.f32 %v2339_v48, %v2339_v48  ;;  %v3162_v48 = vld [vmem:[#allocation78_spill] sm:$0xff]  ;;  %v3170_v28 = vld [vmem:[#allocation15_spill] sm:$0xff] }
  0xbd   : > { %v2609_v16 = vadd.f32 %v744_v3, %v743_v4  ;;  %v553_v41 = vmul.f32 %v3159_v59, %v3159_v59  ;;  %v554_v34 = vmul.f32 %v3160_v30, %v3160_v30  ;;  %v745_v29 = vmul.f32 %v2342_v47, %v2342_v47  ;;  %v3165_v47 = vld [vmem:[#allocation13_spill] sm:$0xff]  ;;  %594 = vadd.xlane.f32.xlu0 %v3166_v13  ;;  %v3167_v50 = vld [vmem:[#allocation14_spill] sm:$0xff]  ;;  %v3173_v59 = vld [vmem:[#allocation16_spill] sm:$0xff] }
  0xbe   : > { %v2618_v32 = vadd.f32 %v712_v26, %v711_v27  ;;  %v2620_v7 = vadd.f32 %v586_v45, %v585_v43  ;;  %v746_v9 = vmul.f32 %v3162_v48, %v3162_v48  ;;  %v713_v63 = vmul.f32 %v3163_v53, %v3163_v53  ;;  %597 = vadd.xlane.f32.xlu1 %v3165_v47  ;;  %v3168_v4 = vld [vmem:[#allocation46_spill] sm:$0xff]  ;;  %v3172_v45 = vld [vmem:[#allocation51_spill] sm:$0xff]  ;;  %v3176_v48 = vld [vmem:[#allocation49_spill] sm:$0xff] }
  0xbf   : > { %v2626_v0 = vadd.f32 %v554_v34, %v553_v41  ;;  %v714_v21 = vmul.f32 %v3164_v10, %v3164_v10  ;;  %v557_v3 = vmul.f32 %v3168_v4, %v3168_v4  ;;  %v558_v27 = vmul.f32 %v3169_v19, %v3169_v19  ;;  %v3171_v26 = vld [vmem:[#allocation50_spill] sm:$0xff]  ;;  %v3177_v53 = vld [vmem:[#allocation52_spill] sm:$0xff]  ;;  %v3178_v10 = vld [vmem:[#allocation53_spill] sm:$0xff] }
  0xc0   : > { %v2630_v35 = vadd.f32 %v746_v9, %v745_v29  ;;  %v555_v43 = vmul.f32 %v3171_v26, %v3171_v26  ;;  %v556_v15 = vmul.f32 %v3172_v45, %v3172_v45  ;;  %v3174_v30 = vld [vmem:[#allocation22_spill] sm:$0xff]  ;;  %v3175_v29 = vld [vmem:[#allocation48_spill] sm:$0xff]  ;;  %v718_v9 = vmul.f32 %v3176_v48, %v3176_v48  ;;  %v3184_v45 = vld [vmem:[#allocation55_spill] sm:$0xff] }
  0xc1   : > { %v2633_v38 = vadd.f32 %v714_v21, %v713_v63  ;;  %600 = vadd.xlane.f32.xlu0 %v3170_v28  ;;  %v638_v41 = vadd.f32 %v558_v27, %v557_v3  ;;  %v717_v14 = vmul.f32 %v3175_v29, %v3175_v29  ;;  %v715_v63 = vmul.f32 %v3177_v53, %v3177_v53  ;;  %v3179_v47 = vld [vmem:[#allocation26_spill] sm:$0xff]  ;;  %v3181_v3 = vld [vmem:[#allocation56_spill] sm:$0xff]  ;;  %v3182_v27 = vld [vmem:[#allocation57_spill] sm:$0xff] }
  0xc2   : > { %603 = vadd.xlane.f32.xlu1 %v3167_v50  ;;  %v635_v34 = vadd.f32 %v556_v15, %v555_v43  ;;  %v716_v21 = vmul.f32 %v3178_v10, %v3178_v10  ;;  %v3180_v50 = vld [vmem:[#allocation36_spill] sm:$0xff]  ;;  %v559_v19 = vmul.f32 %v3181_v3, %v3181_v3  ;;  %v560_v28 = vmul.f32 %v3182_v27, %v3182_v27  ;;  %v3183_v26 = vld [vmem:[#allocation54_spill] sm:$0xff]  ;;  %v3188_v53 = vld [vmem:[#allocation67_spill] sm:$0xff] }
  0xc3   : > { %v798_v13 = vadd.f32 %v718_v9, %v717_v14  ;;  %v561_v43 = vmul.f32 %v3183_v26, %v3183_v26  ;;  %v562_v15 = vmul.f32 %v3184_v45, %v3184_v45  ;;  %v3187_v14 = vld [vmem:[#allocation29_spill] sm:$0xff]  ;;  %v3190_v10 = vld [vmem:[#allocation62_spill] sm:$0xff] }
  0xc4   : > { %v795_v4 = vadd.f32 %v716_v21, %v715_v63  ;;  %v3189_v63 = vld [vmem:[#allocation39_spill] sm:$0xff]  ;;  %v3191_v21 = vld [vmem:[#allocation76_spill] sm:$0xff] }
  0xc5   : > { %606 = vadd.xlane.f32.xlu0 %v3174_v30  ;;  %v644_v48 = vadd.f32 %v562_v15, %v561_v43 }
  0xc6   : > { %609 = vadd.xlane.f32.xlu1 %v3173_v59  ;;  %v641_v59 = vadd.f32 %v560_v28, %v559_v19  ;;  %v3051_v28 = vlaneseq }
  0xc9   : > { %636 = vadd.xlane.f32.xlu0 %v635_v34  ;;  %v3186_v34 = vld [vmem:[#allocation60_spill] sm:$0xff] }
  0xca   : > { %639 = vadd.xlane.f32.xlu1 %v638_v41  ;;  %v3185_v41 = vld [vmem:[#allocation59_spill] sm:$0xff]  ;;  %v720_v29 = vmul.f32 %v3186_v34, %v3186_v34 }
  0xcb   : > { %v719_v30 = vmul.f32 %v3185_v41, %v3185_v41 }
  0xcd   : > { %748 = vadd.xlane.f32.xlu0 %v3180_v50  ;;  %v801_v9 = vadd.f32 %v720_v29, %v719_v30  ;;  %v2788_v30 = vand.u32 127, %v3051_v28 }
  0xce   : > { %751 = vadd.xlane.f32.xlu1 %v3179_v47  ;;  %v3192_v47 = vld [vmem:[#allocation77_spill] sm:$0xff] }
  0xd1   : > { %796 = vadd.xlane.f32.xlu0 %v795_v4 }
  0xd2   : > { %799 = vadd.xlane.f32.xlu1 %v798_v13  ;;  %v3193_v13 = vld [vmem:[#allocation79_spill] sm:$0xff] }
  0xd5   : > { %642 = vadd.xlane.f32.xlu0 %v641_v59 }
  0xd6   : > { %754 = vadd.xlane.f32.xlu1 %v3187_v14 }
  0xd9   : > { %802 = vadd.xlane.f32.xlu0 %v801_v9 }
  0xda   : > { %645 = vadd.xlane.f32.xlu1 %v644_v48 }
  0xdd   : > { %757 = vadd.xlane.f32.xlu0 %v3189_v63  ;;  %v2791_v63 = vshrl.u32 %v3051_v28, 7 }
  0xde   : > { %805 = vadd.xlane.f32.xlu1 %v3188_v53 }
  0xe1   : > { %648 = vadd.xlane.f32.xlu0 %v3191_v21 }
  0xe2   : > { %760 = vadd.xlane.f32.xlu1 %v3190_v10  ;;  %v1016_v10 = vadd.s32 4294967288, %v2788_v30 }
  0xe5   : > { %808 = vadd.xlane.f32.xlu0 %v3193_v13 }
  0xe6   : > { %651 = vadd.xlane.f32.xlu1 %v3192_v47 }
  0xe9   : > { %763 = vadd.xlane.f32.xlu0 %v2392_v37 }
  0xea   : > { %811 = vadd.xlane.f32.xlu1 %v2389_v58 }
  0xed   : > { %654 = vadd.xlane.f32.xlu0 %v2414_v6 }
  0xee   : > { %766 = vadd.xlane.f32.xlu1 %v2398_v23 }
  0xf1   : > { %814 = vadd.xlane.f32.xlu0 %v2424_v20 }
  0xf2   : > { %657 = vadd.xlane.f32.xlu1 %v2422_v2 }
  0xf5   : > { %769 = vadd.xlane.f32.xlu0 %v2432_v51 }
  0xf6   : > { %817 = vadd.xlane.f32.xlu1 %v2430_v25 }
  0xf9   : > { %612 = vadd.xlane.f32.xlu0 %v2448_v62 }
  0xfa   : > { %660 = vadd.xlane.f32.xlu1 %v2439_v56 }
  0xfd   : > { %772 = vadd.xlane.f32.xlu0 %v2464_v46 }
  0xfe   : > { %820 = vadd.xlane.f32.xlu1 %v2456_v40 }
 0x101   : > { %615 = vadd.xlane.f32.xlu0 %v2473_v36 }
 0x102   : > { %663 = vadd.xlane.f32.xlu1 %v2466_v31  ;;  %v2693_v23 = vpop.xlane.xlu1 %434 }
 0x104   : > { %v2695_v58 = vpop.xlane.xlu0 %428 }
 0x105   : > { %775 = vadd.xlane.f32.xlu0 %v2490_v12 }
 0x106   : > { %823 = vadd.xlane.f32.xlu1 %v2482_v24  ;;  %v2699_v37 = vpop.xlane.xlu1 %437 }
 0x108   : > { %v2701_v6 = vpop.xlane.xlu0 %431 }
 0x109   : > { %618 = vadd.xlane.f32.xlu0 %v2498_v54 }
 0x10a   : > { %666 = vadd.xlane.f32.xlu1 %v2492_v42  ;;  %v2705_v2 = vpop.xlane.xlu1 %443 }
 0x10c   : > { %v2707_v20 = vpop.xlane.xlu0 %440 }
 0x10d   : > { %778 = vadd.xlane.f32.xlu0 %v2516_v57 }
 0x10e   : > { %826 = vadd.xlane.f32.xlu1 %v2507_v55  ;;  %v2711_v25 = vpop.xlane.xlu1 %449 }
 0x110   : > { %v2713_v51 = vpop.xlane.xlu0 %446 }
 0x111   : > { %621 = vadd.xlane.f32.xlu0 %v2524_v8 }
 0x112   : > { %669 = vadd.xlane.f32.xlu1 %v2518_v17  ;;  %v2717_v56 = vpop.xlane.xlu1 %455 }
 0x114   : > { %v2719_v62 = vpop.xlane.xlu0 %452 }
 0x115   : > { %781 = vadd.xlane.f32.xlu0 %v2541_v60 }
 0x116   : > { %829 = vadd.xlane.f32.xlu1 %v2532_v33  ;;  %v2723_v40 = vpop.xlane.xlu1 %461 }
 0x118   : > { %v2725_v46 = vpop.xlane.xlu0 %458 }
 0x119   : > { %624 = vadd.xlane.f32.xlu0 %v2550_v11 }
 0x11a   : > { %672 = vadd.xlane.f32.xlu1 %v2543_v49  ;;  %v2729_v31 = vpop.xlane.xlu1 %467 }
 0x11c   : > { %v2731_v36 = vpop.xlane.xlu0 %464 }
 0x11d   : > { %784 = vadd.xlane.f32.xlu0 %v2566_v5 }
 0x11e   : > { %832 = vadd.xlane.f32.xlu1 %v2558_v44  ;;  %v2735_v24 = vpop.xlane.xlu1 %473 }
 0x11f   : > { %3194 = vst [vmem:[#allocation21_spill] sm:$0xff] %v2735_v24 }
 0x120   : > { %v2737_v12 = vpop.xlane.xlu0 %470 }
 0x121   : > { %627 = vadd.xlane.f32.xlu0 %v2575_v61 }
 0x122   : > { %675 = vadd.xlane.f32.xlu1 %v2568_v1  ;;  %v2741_v42 = vpop.xlane.xlu1 %479 }
 0x124   : > { %v2743_v54 = vpop.xlane.xlu0 %476 }
 0x125   : > { %787 = vadd.xlane.f32.xlu0 %v2592_v22 }
 0x126   : > { %835 = vadd.xlane.f32.xlu1 %v2584_v18  ;;  %v2747_v55 = vpop.xlane.xlu1 %485 }
 0x128   : > { %v2749_v57 = vpop.xlane.xlu0 %482 }
 0x129   : > { %630 = vadd.xlane.f32.xlu0 %v2600_v52 }
 0x12a   : > { %678 = vadd.xlane.f32.xlu1 %v2594_v39  ;;  %v2753_v17 = vpop.xlane.xlu1 %491 }
 0x12c   : > { %v2755_v8 = vpop.xlane.xlu0 %488 }
 0x12d   : > { %790 = vadd.xlane.f32.xlu0 %v2618_v32 }
 0x12e   : > { %838 = vadd.xlane.f32.xlu1 %v2609_v16  ;;  %v2759_v33 = vpop.xlane.xlu1 %497 }
 0x131   : > { %633 = vadd.xlane.f32.xlu0 %v2626_v0 }
 0x132   : > { %681 = vadd.xlane.f32.xlu1 %v2620_v7  ;;  %v2761_v60 = vpop.xlane.xlu0 %494 }
 0x133   : > { %v2765_v49 = vpop.xlane.xlu1 %503 }
 0x135   : > { %793 = vadd.xlane.f32.xlu0 %v2633_v38 }
 0x136   : > { %841 = vadd.xlane.f32.xlu1 %v2630_v35  ;;  %v2767_v11 = vpop.xlane.xlu0 %500 }
 0x138   : > { %v2769_v44 = vpop.xlane.xlu1 %509 }
 0x13a   : > { %v2771_v5 = vpop.xlane.xlu0 %506 }
 0x13c   : > { %v2773_v1 = vpop.xlane.xlu1 %515 }
 0x13e   : > { %v2775_v61 = vpop.xlane.xlu0 %512 }
 0x140   : > { %v2777_v18 = vpop.xlane.xlu1 %521 }
 0x142   : > { %v2779_v22 = vpop.xlane.xlu0 %518 }
 0x145   : > { %v592_v39 = vpop.xlane.xlu1 %591 }
 0x146   : > { %v589_v52 = vpop.xlane.xlu0 %588 }
 0x14a   : > { %v595_v32 = vpop.xlane.xlu0 %594 }
 0x14b   : > { %v598_v16 = vpop.xlane.xlu1 %597 }
 0x14e   : > { %v601_v0 = vpop.xlane.xlu0 %600 }
 0x14f   : > { %v2781_v7 = vpop.xlane.xlu1 %603 }
 0x152   : > { %v2785_v38 = vpop.xlane.xlu0 %606 }
 0x153   : > { %v2783_v35 = vpop.xlane.xlu1 %609 }
 0x156   : > { %v637_v4 = vpop.xlane.xlu0 %636 }
 0x157   : > { %v640_v50 = vpop.xlane.xlu1 %639 }
 0x15a   : > { %v749_v27 = vpop.xlane.xlu0 %748 }
 0x15b   : > { %v752_v3 = vpop.xlane.xlu1 %751  ;;  %v843_v26 = vmul.f32 %v749_v27, %v589_v52 }
 0x15c   : > { %v844_v19 = vmul.f32 %v752_v3, %v592_v39  ;;  %v1019_v39 = vsub.s32 %v1016_v10, %v2791_v63 }
 0x15d   : > { %v875_v45 = vmax.f32 %v843_v26, 1e-16 }
 0x15e   : > { %v876_v43 = vmax.f32 %v844_v19, 1e-16  ;;  %v797_v41 = vpop.xlane.xlu0 %796 }
 0x15f   : > { %v800_v15 = vpop.xlane.xlu1 %799  ;;  %v859_v34 = vmul.f32 %v797_v41, %v637_v4  ;;  %v1014_v4 = vsub.s32 %v2788_v30, %v2791_v63 }
 0x160   : > { %1425 = vrsqrt.f32 %v876_v43  ;;  %v860_v59 = vmul.f32 %v800_v15, %v640_v50 }
 0x161   : > { %1427 = vrsqrt.f32 %v875_v45  ;;  %v891_v14 = vmax.f32 %v859_v34, 1e-16 }
 0x162   : > { %v892_v29 = vmax.f32 %v860_v59, 1e-16  ;;  %v643_v53 = vpop.xlane.xlu0 %642  ;;  %v1023_v59 = vadd.s32 4294967280, %v2788_v30 }
 0x163   : > { %v755_v48 = vpop.xlane.xlu1 %754 }
 0x164   : > { %1429 = vrsqrt.f32 %v892_v29  ;;  %v845_v9 = vmul.f32 %v755_v48, %v595_v32 }
 0x165   : > { %1431 = vrsqrt.f32 %v891_v14 }
 0x166   : > { %v877_v21 = vmax.f32 %v845_v9, 1e-16  ;;  %v803_v13 = vpop.xlane.xlu0 %802 }
 0x167   : > { %v646_v47 = vpop.xlane.xlu1 %645  ;;  %v861_v52 = vmul.f32 %v803_v13, %v643_v53 }
 0x168   : > { %1433 = vrsqrt.f32 %v877_v21 }
 0x169   : > { %v893_v19 = vmax.f32 %v861_v52, 1e-16  ;;  %v1026_v52 = vsub.s32 %v1023_v59, %v2791_v63 }
 0x16a   : > { %v1426_v50 = vpop.eup %1425  ;;  %v758_v45 = vpop.xlane.xlu0 %757 }
 0x16b   : > { %v1428_v3 = vpop.eup %1427  ;;  %v940_v32 = vmul.f32 %v1426_v50, %v2701_v6  ;;  %v806_v27 = vpop.xlane.xlu1 %805  ;;  %1435 = vrsqrt.f32 %v893_v19  ;;  %v846_v41 = vmul.f32 %v758_v45, %v598_v16 }
 0x16c   : > { %v939_v26 = vmul.f32 %v1428_v3, %v2695_v58  ;;  %v862_v43 = vmul.f32 %v806_v27, %v646_v47 }
 0x16d   : > { %v1020_v15 = vrot.slane %v940_v32, %v1019_v39  ;;  %v878_v53 = vmax.f32 %v846_v41, 1e-16 }
 0x16e   : > { %v1430_v34 = vpop.eup %1429  ;;  %v1015_v29 = vrot.slane %v939_v26, %v1014_v4  ;;  %v894_v14 = vmax.f32 %v862_v43, 1e-16  ;;  %v649_v47 = vpop.xlane.xlu0 %648 }
 0x16f   : > { %v1432_v48 = vpop.eup %1431  ;;  %v956_v9 = vmul.f32 %v1430_v34, %v2741_v42  ;;  %v761_v6 = vpop.xlane.xlu1 %760  ;;  %v1037_v34 = vadd.s32 4294967264, %v2788_v30 }
 0x170   : > { %v1022_v10 = vsel %vm1021_vm0, %v1020_v15, %v1015_v29  ;;  %v955_v21 = vmul.f32 %v1432_v48, %v2743_v54  ;;  %1437 = vrsqrt.f32 %v894_v14  ;;  %v847_v58 = vmul.f32 %v761_v6, %v601_v0 }
 0x171   : > { %v1128_v13 = vrot.slane %v956_v9, %v1019_v39  ;;  %1439 = vrsqrt.f32 %v878_v53  ;;  %v1030_v54 = vadd.s32 4294967272, %v2788_v30 }
 0x172   : > { %v1434_v16 = vpop.eup %1433  ;;  %v1124_v50 = vrot.slane %v955_v21, %v1014_v4  ;;  %v879_v3 = vmax.f32 %v847_v58, 1e-16  ;;  %v809_v27 = vpop.xlane.xlu0 %808 }
 0x173   : > { %v941_v32 = vmul.f32 %v1434_v16, %v2693_v23  ;;  %v652_v19 = vpop.xlane.xlu1 %651  ;;  %v863_v0 = vmul.f32 %v809_v27, %v649_v47  ;;  %v1033_v23 = vsub.s32 %v1030_v54, %v2791_v63  ;;  %v1044_v27 = vadd.s32 4294967256, %v2788_v30 }
 0x174   : > { %v1129_v42 = vsel %vm1021_vm0, %v1128_v13, %v1124_v50  ;;  %1441 = vrsqrt.f32 %v879_v3 }
 0x175   : > { %v1027_v26 = vrot.slane %v941_v32, %v1026_v52  ;;  %v1436_v43 = vpop.eup %1435  ;;  %v895_v45 = vmax.f32 %v863_v0, 1e-16 }
 0x176   : > { %v957_v4 = vmul.f32 %v1436_v43, %v2749_v57  ;;  %v764_v41 = vpop.xlane.xlu0 %763 }
 0x177   : > { %v1029_v39 = vsel %vm1028_vm1, %v1027_v26, %v1022_v10  ;;  %v812_v15 = vpop.xlane.xlu1 %811  ;;  %1443 = vrsqrt.f32 %v895_v45  ;;  %v848_v29 = vmul.f32 %v764_v41, %v2781_v7  ;;  %v1040_v7 = vsub.s32 %v1037_v34, %v2791_v63 }
 0x178   : > { %v864_v59 = vmul.f32 %v812_v15, %v652_v19  ;;  %v1133_v48 = vrot.slane %v957_v4, %v1026_v52  ;;  %v1047_v15 = vsub.s32 %v1044_v27, %v2791_v63 }
 0x179   : > { %v880_v10 = vmax.f32 %v848_v29, 1e-16 }
 0x17a   : > { %v1438_v14 = vpop.eup %1437  ;;  %v896_v9 = vmax.f32 %v864_v59, 1e-16  ;;  %v1134_v57 = vsel %vm1028_vm1, %v1133_v48, %v1129_v42  ;;  %v2816_v13 = vpop.xlane.xlu0 %654 }
 0x17b   : > { %v1440_v53 = vpop.eup %1439  ;;  %v958_v6 = vmul.f32 %v1438_v14, %v2747_v55  ;;  %v767_v21 = vpop.xlane.xlu1 %766 }
 0x17c   : > { %v942_v58 = vmul.f32 %v1440_v53, %v2699_v37  ;;  %1445 = vrsqrt.f32 %v896_v9  ;;  %v849_v47 = vmul.f32 %v767_v21, %v2785_v38 }
 0x17d   : > { %v1138_v16 = vrot.slane %v958_v6, %v1033_v23  ;;  %1447 = vrsqrt.f32 %v880_v10 }
 0x17e   : > { %v1442_v52 = vpop.eup %1441  ;;  %v1034_v50 = vrot.slane %v942_v58, %v1033_v23  ;;  %v881_v3 = vmax.f32 %v849_v47, 1e-16  ;;  %v815_v37 = vpop.xlane.xlu0 %814 }
 0x17f   : > { %v1139_v55 = vsel %vm1035_vm2, %v1138_v16, %v1134_v57  ;;  %v943_v32 = vmul.f32 %v1442_v52, %v2707_v20  ;;  %v658_v19 = vpop.xlane.xlu1 %657  ;;  %v1051_v20 = vadd.s32 4294967248, %v2788_v30 }
 0x180   : > { %v1036_v42 = vsel %vm1035_vm2, %v1034_v50, %v1029_v39  ;;  %1449 = vrsqrt.f32 %v881_v3 }
 0x181   : > { %v1041_v38 = vrot.slane %v943_v32, %v1040_v7  ;;  %v1444_v26 = vpop.eup %1443  ;;  %v2832_v53 = vsub.s32 %v1051_v20, %v2791_v63 }
 0x182   : > { %v959_v43 = vmul.f32 %v1444_v26, %v2755_v8  ;;  %v770_v45 = vpop.xlane.xlu0 %769 }
 0x183   : > { %v1043_v54 = vsel %vm1042_vm3, %v1041_v38, %v1036_v42  ;;  %v818_v0 = vpop.xlane.xlu1 %817  ;;  %v850_v4 = vmul.f32 %v770_v45, %v2783_v35 }
 0x184   : > { %v1143_v59 = vrot.slane %v959_v43, %v1040_v7 }
 0x185   : > { %v882_v34 = vmax.f32 %v850_v4, 1e-16 }
 0x186   : > { %v1446_v39 = vpop.eup %1445  ;;  %v1144_v14 = vsel %vm1042_vm3, %v1143_v59, %v1139_v55  ;;  %v613_v8 = vpop.xlane.xlu0 %612 }
 0x187   : > { %v1448_v41 = vpop.eup %1447  ;;  %v960_v23 = vmul.f32 %v1446_v39, %v2753_v17  ;;  %v661_v29 = vpop.xlane.xlu1 %660  ;;  %1451 = vrsqrt.f32 %v882_v34 }
 0x188   : > { %v944_v48 = vmul.f32 %v1448_v41, %v2705_v2  ;;  %v1058_v2 = vadd.s32 4294967240, %v2788_v30  ;;  %v865_v41 = vmul.f32 %v815_v37, %v2816_v13 }
 0x189   : > { %v1148_v9 = vrot.slane %v960_v23, %v1047_v15  ;;  %v866_v23 = vmul.f32 %v818_v0, %v658_v19 }
 0x18a   : > { %v1450_v6 = vpop.eup %1449  ;;  %v1048_v35 = vrot.slane %v944_v48, %v1047_v15  ;;  %v773_v58 = vpop.xlane.xlu0 %772  ;;  %v2841_v50 = vsub.s32 %v1058_v2, %v2791_v63 }
 0x18b   : > { %v2834_v10 = vsel %vm1049_vm4, %v1148_v9, %v1144_v14  ;;  %v945_v21 = vmul.f32 %v1450_v6, %v2713_v51  ;;  %v821_v17 = vpop.xlane.xlu1 %820  ;;  %v851_v48 = vmul.f32 %v773_v58, %v613_v8  ;;  %v897_v9 = vmax.f32 %v865_v41, 1e-16 }
 0x18c   : > { %v1050_v57 = vsel %vm1049_vm4, %v1048_v35, %v1043_v54  ;;  %v867_v14 = vmul.f32 %v821_v17, %v661_v29 }
 0x18d   : > { %v1055_v47 = vrot.slane %v945_v21, %v2832_v53  ;;  %v898_v21 = vmax.f32 %v866_v23, 1e-16  ;;  %1453 = vrsqrt.f32 %v897_v9 }
 0x18e   : > { %v616_v52 = vpop.xlane.xlu0 %615  ;;  %v899_v2 = vmax.f32 %v867_v14, 1e-16  ;;  %v1065_v14 = vadd.s32 4294967232, %v2788_v30 }
 0x18f   : > { %v1057_v16 = vsel %vm1056_vm5, %v1055_v47, %v1050_v57  ;;  %v664_v7 = vpop.xlane.xlu1 %663  ;;  %1455 = vrsqrt.f32 %v898_v21 }
 0x190   : > { %1457 = vrsqrt.f32 %v899_v2  ;;  %v1093_v2 = vadd.s32 4294967200, %v2788_v30 }
 0x191   : > { %v1452_v3 = vpop.eup %1451 }
 0x192   : > { %v946_v32 = vmul.f32 %v1452_v3, %v2711_v25  ;;  %v776_v51 = vpop.xlane.xlu0 %775  ;;  %v883_v3 = vmax.f32 %v851_v48, 1e-16 }
 0x193   : > { %v824_v55 = vpop.xlane.xlu1 %823  ;;  %v852_v57 = vmul.f32 %v776_v51, %v616_v52 }
 0x194   : > { %v1062_v42 = vrot.slane %v946_v32, %v2841_v50  ;;  %v868_v6 = vmul.f32 %v824_v55, %v664_v7  ;;  %1459 = vrsqrt.f32 %v883_v3 }
 0x195   : > { %v884_v13 = vmax.f32 %v852_v57, 1e-16  ;;  %v1086_v57 = vadd.s32 4294967208, %v2788_v30 }
 0x196   : > { %v2846_v27 = vsel %vm1063_vm6, %v1062_v42, %v1057_v16  ;;  %v619_v26 = vpop.xlane.xlu0 %618  ;;  %v900_v42 = vmax.f32 %v868_v6, 1e-16  ;;  %v1072_v6 = vadd.s32 4294967224, %v2788_v30 }
 0x197   : > { %v667_v38 = vpop.xlane.xlu1 %666 }
 0x198   : > { %1461 = vrsqrt.f32 %v900_v42 }
 0x199   : > { %1463 = vrsqrt.f32 %v884_v13  ;;  %v2858_v13 = vsub.s32 %v1065_v14, %v2791_v63 }
 0x19a   : > { %v779_v43 = vpop.xlane.xlu0 %778 }
 0x19b   : > { %v827_v54 = vpop.xlane.xlu1 %826  ;;  %v853_v32 = vmul.f32 %v779_v43, %v619_v26 }
 0x19c   : > { %v869_v16 = vmul.f32 %v827_v54, %v667_v38 }
 0x19d   : > { %v885_v8 = vmax.f32 %v853_v32, 1e-16 }
 0x19e   : > { %v622_v15 = vpop.xlane.xlu0 %621  ;;  %v901_v0 = vmax.f32 %v869_v16, 1e-16  ;;  %v1100_v16 = vadd.s32 4294967192, %v2788_v30 }
 0x19f   : > { %v670_v45 = vpop.xlane.xlu1 %669 }
 0x1a0   : > { %1465 = vrsqrt.f32 %v901_v0 }
 0x1a1   : > { %1467 = vrsqrt.f32 %v885_v8  ;;  %v2862_v8 = vsub.s32 %v1072_v6, %v2791_v63 }
 0x1a2   : > { %v782_v4 = vpop.xlane.xlu0 %781 }
 0x1a3   : > { %v830_v20 = vpop.xlane.xlu1 %829  ;;  %v854_v19 = vmul.f32 %v782_v4, %v622_v15 }
 0x1a4   : > { %v870_v28 = vmul.f32 %v830_v20, %v670_v45 }
 0x1a5   : > { %v886_v55 = vmax.f32 %v854_v19, 1e-16  ;;  %v1107_v19 = vadd.s32 4294967184, %v2788_v30 }
 0x1a6   : > { %v625_v59 = vpop.xlane.xlu0 %624  ;;  %v902_v58 = vmax.f32 %v870_v28, 1e-16 }
 0x1a7   : > { %v673_v39 = vpop.xlane.xlu1 %672 }
 0x1a8   : > { %1469 = vrsqrt.f32 %v902_v58  ;;  %v973_v58 = vadd.s32 128, %v2788_v30 }
 0x1a9   : > { %1471 = vrsqrt.f32 %v886_v55  ;;  %v975_v55 = vstv %s1365_s20 }
 0x1aa   : > { %v785_v34 = vpop.xlane.xlu0 %784 }
 0x1ab   : > { %v833_v25 = vpop.xlane.xlu1 %832  ;;  %v855_v17 = vmul.f32 %v785_v34, %v625_v59 }
 0x1ac   : > { %v871_v29 = vmul.f32 %v833_v25, %v673_v39  ;;  %v1454_v39 = vpop.eup %1453 }
 0x1ad   : > { %v887_v54 = vmax.f32 %v855_v17, 1e-16  ;;  %v961_v42 = vmul.f32 %v1454_v39, %v2761_v60  ;;  %v2869_v60 = vsub.s32 %v1086_v57, %v2791_v63 }
 0x1ae   : > { %v628_v47 = vpop.xlane.xlu0 %627  ;;  %v903_v26 = vmax.f32 %v871_v29, 1e-16 }
 0x1af   : > { %v676_v35 = vpop.xlane.xlu1 %675 }
 0x1b0   : > { %1473 = vrsqrt.f32 %v903_v26 }
 0x1b1   : > { %1475 = vrsqrt.f32 %v887_v54 }
 0x1b2   : > { %v788_v37 = vpop.xlane.xlu0 %787 }
 0x1b3   : > { %v836_v24 = vpop.xlane.xlu1 %835  ;;  %v856_v51 = vmul.f32 %v788_v37, %v628_v47 }
 0x1b4   : > { %v872_v7 = vmul.f32 %v836_v24, %v676_v35  ;;  %v1456_v24 = vpop.eup %1455  ;;  %v1079_v35 = vadd.s32 4294967216, %v2788_v30 }
 0x1b5   : > { %v888_v15 = vmax.f32 %v856_v51, 1e-16  ;;  %v1458_v41 = vpop.eup %1457  ;;  %v1114_v51 = vadd.s32 4294967176, %v2788_v30  ;;  %v962_v54 = vmul.f32 %v1456_v24, %v2759_v33 }
 0x1b6   : > { %v631_v38 = vpop.xlane.xlu0 %630  ;;  %v904_v43 = vmax.f32 %v872_v7, 1e-16  ;;  %v1460_v34 = vpop.eup %1459  ;;  %v2865_v17 = vsub.s32 %v1079_v35, %v2791_v63  ;;  %v963_v39 = vmul.f32 %v1458_v41, %v2767_v11 }
 0x1b7   : > { %v679_v52 = vpop.xlane.xlu1 %678  ;;  %v1462_v9 = vpop.eup %1461  ;;  %v947_v33 = vmul.f32 %v1460_v34, %v2719_v62  ;;  %v1117_v11 = vsub.s32 %v1114_v51, %v2791_v63 }
 0x1b8   : > { %1477 = vrsqrt.f32 %v904_v43  ;;  %v1464_v21 = vpop.eup %1463  ;;  %v2874_v43 = vsub.s32 %v1093_v2, %v2791_v63  ;;  %v964_v24 = vmul.f32 %v1462_v9, %v2765_v49  ;;  %v976_v49 = vadd.s32 %v975_v55, %v2788_v30 }
 0x1b9   : > { %1479 = vrsqrt.f32 %v888_v15  ;;  %v1466_v47 = vpop.eup %1465  ;;  %v948_v14 = vmul.f32 %v1464_v21, %v2717_v56  ;;  %v1163_v56 = vrot.slane %v963_v39, %v2858_v13 }
 0x1ba   : > { %v791_v4 = vpop.xlane.xlu0 %790  ;;  %v1468_v32 = vpop.eup %1467  ;;  %vm978_vm0 = vcmp.lt.s32.totalorder %v976_v49, 1030 }
 0x1bb   : > { %v839_v45 = vpop.xlane.xlu1 %838  ;;  %v857_v28 = vmul.f32 %v791_v4, %v631_v38  ;;  %v1470_v29 = vpop.eup %1469  ;;  %v1153_v4 = vrot.slane %v961_v42, %v2832_v53  ;;  %v965_v53 = vmul.f32 %v1466_v47, %v2771_v5  ;;  %v949_v6 = vmul.f32 %v1468_v32, %v2725_v46 }
 0x1bc   : > { %v873_v20 = vmul.f32 %v839_v45, %v679_v52  ;;  %v1472_v52 = vpop.eup %1471  ;;  %v2877_v45 = vsub.s32 %v1100_v16, %v2791_v63  ;;  %v966_v62 = vmul.f32 %v1470_v29, %v2769_v44  ;;  %v1168_v46 = vrot.slane %v964_v24, %v2862_v8 }
 0x1bd   : > { %v889_v25 = vmax.f32 %v857_v28, 1e-16  ;;  %v1474_v26 = vpop.eup %1473  ;;  %v2882_v28 = vsub.s32 %v1107_v19, %v2791_v63  ;;  %v1154_v9 = vsel %vm1056_vm5, %v1153_v4, %v2834_v10  ;;  %v950_v5 = vmul.f32 %v1472_v52, %v2723_v40 }
 0x1be   : > { %v905_v59 = vmax.f32 %v873_v20, 1e-16  ;;  %v634_v48 = vpop.xlane.xlu0 %633  ;;  %v1476_v20 = vpop.eup %1475  ;;  %v967_v35 = vmul.f32 %v1474_v26, %v2775_v61  ;;  %v1076_v30 = vrot.slane %v948_v14, %v2862_v8  ;;  %v1173_v57 = vrot.slane %v965_v53, %v2865_v17 }
 0x1bf   : > { %v682_v23 = vpop.xlane.xlu1 %681  ;;  %v951_v44 = vmul.f32 %v1476_v20, %v2731_v36  ;;  %v1083_v61 = vrot.slane %v949_v6, %v2865_v17  ;;  %v1178_v2 = vrot.slane %v966_v62, %v2869_v60  ;;  %v1623_v32 = vmov 1966171168  }
 0x1c0   : > { %1481 = vrsqrt.f32 %v905_v59  ;;  %v1208_v42 = vunpack.c.l.s4 %v1623_v32  ;;  %v3196_v14 = vlaneseq }
 0x1c1   : > { %1483 = vrsqrt.f32 %v889_v25  ;;  %v2886_v25 = vadd.s32 %v975_v55, %v973_v58 }
 0x1c2   : > { %v794_v0 = vpop.xlane.xlu0 %793  ;;  %v1478_v59 = vpop.eup %1477  ;;  %v1209_v51 = vunpack.c.0.s8 %v1208_v42  ;;  %vm1224_vm1 = vcmp.lt.s32.totalorder %v3196_v14, 256 }
 0x1c3   : > { %v842_v3 = vpop.xlane.xlu1 %841  ;;  %v858_v7 = vmul.f32 %v794_v0, %v634_v48  ;;  %v1158_v48 = vrot.slane %v962_v54, %v2841_v50  ;;  %v1069_v50 = vrot.slane %v947_v33, %v2858_v13  ;;  %v968_v21 = vmul.f32 %v1478_v59, %v2773_v1 }
 0x1c4   : > { %v874_v37 = vmul.f32 %v842_v3, %v682_v23  ;;  %v1480_v23 = vpop.eup %1479  ;;  %v1090_v1 = vrot.slane %v950_v5, %v2869_v60  ;;  %v1183_v3 = vrot.slane %v967_v35, %v2874_v43  ;;  %v1097_v13 = vrot.slane %v951_v44, %v2874_v43 }
 0x1c5   : > { %v890_v15 = vmax.f32 %v858_v7, 1e-16  ;;  %v952_v10 = vmul.f32 %v1480_v23, %v2729_v31  ;;  %v1159_v40 = vsel %vm1063_vm6, %v1158_v48, %v1154_v9  ;;  %v1071_v31 = vsel %vm1070_vm7, %v1069_v50, %v2846_v27 }
 0x1c6   : > { %v906_v38 = vmax.f32 %v874_v37, 1e-16  ;;  %v1164_v36 = vsel %vm1070_vm7, %v1163_v56, %v1159_v40  ;;  %v1188_v19 = vrot.slane %v968_v21, %v2877_v45  ;;  %vm979_vm15 = vcmp.lt.s32.totalorder %v2886_v25, 1030 }
 0x1c7   : > { %v1104_v29 = vrot.slane %v952_v10, %v2877_v45  ;;  %v1212_v59 = vsub.s32 %v1209_v51, %v2791_v63 }
 0x1c8   : > { %1485 = vrsqrt.f32 %v906_v38  ;;  %v3195_v38 = vld [vmem:[#allocation21_spill] sm:$0xff] }
 0x1c9   : > { %1487 = vrsqrt.f32 %v890_v15 }
 0x1ca   : > { %v1482_v41 = vpop.eup %1481 }
 0x1cb   : > { %v1484_v34 = vpop.eup %1483  ;;  %v969_v47 = vmul.f32 %v1482_v41, %v2779_v22  ;;  %v1169_v22 = vsel %vm1077_vm8, %v1168_v46, %v1164_v36 }
 0x1cc   : > { %v953_v16 = vmul.f32 %v1484_v34, %v2737_v12  ;;  %v1078_v12 = vsel %vm1077_vm8, %v1076_v30, %v1071_v31  ;;  %v1174_v0 = vsel %vm1084_vm9, %v1173_v57, %v1169_v22 }
 0x1cd   : > { %v1193_v8 = vrot.slane %v969_v47, %v2882_v28  ;;  %v1085_v58 = vsel %vm1084_vm9, %v1083_v61, %v1078_v12  ;;  %v1179_v27 = vsel %vm1091_vm10, %v1178_v2, %v1174_v0 }
 0x1ce   : > { %v1111_v7 = vrot.slane %v953_v16, %v2882_v28  ;;  %v1092_v60 = vsel %vm1091_vm10, %v1090_v1, %v1085_v58  ;;  %v1184_v55 = vsel %vm1098_vm11, %v1183_v3, %v1179_v27 }
 0x1cf   : > { %v1099_v54 = vsel %vm1098_vm11, %v1097_v13, %v1092_v60  ;;  %v1189_v43 = vsel %vm1105_vm12, %v1188_v19, %v1184_v55 }
 0x1d0   : > { %v1106_v15 = vsel %vm1105_vm12, %v1104_v29, %v1099_v54  ;;  %v1194_v20 = vsel %vm1112_vm13, %v1193_v8, %v1189_v43 }
 0x1d1   : > { %v1113_v4 = vsel %vm1112_vm13, %v1111_v7, %v1106_v15 }
 0x1d2   : > { %v1486_v37 = vpop.eup %1485 }
 0x1d3   : > { %v1488_v17 = vpop.eup %1487  ;;  %v970_v52 = vmul.f32 %v1486_v37, %v2777_v18 }
 0x1d4   : > { %v954_v26 = vmul.f32 %v1488_v17, %v3195_v38 }
 0x1d5   : > { %v1198_v45 = vrot.slane %v970_v52, %v1117_v11 }
 0x1d6   : > { %v1118_v18 = vrot.slane %v954_v26, %v1117_v11 }
 0x1d7   : > { %v1199_v39 = vsel %vm1119_vm14, %v1198_v45, %v1194_v20 }
 0x1d8   : > { %v1203_v28 = vsel %vm979_vm15, %v1199_v39, 0.0  ;;  %v1120_v33 = vsel %vm1119_vm14, %v1118_v18, %v1113_v4 }
 0x1d9   : > { %v1202_v24 = vsel %vm978_vm0, %v1120_v33, 0.0 }
 0x1da   : > { %v1206_v25 = vcombine.low %v1202_v24, %v1203_v28  ;;  %1234 = sbr.rel (!%p3197_p6) target bundleno = 508 (0x1fc), region = 40 }
 0x1dc   : > { %v1213_v23 = vrot.slane %v1206_v25, %v1212_v59 }
 0x1de   : > { %v1220_v53 = vrot.slane %v1213_v23, %v1212_v59 }
 0x1e0   : > { %1226 = vst.msk [vmem:[%s217_s25] sm:$0x3] %vm1224_vm1, %v1220_v53 }
 0x1e1   : > { %s3208_s4 = smov (!%p1237_p5, %s1236_s4), 2 }
 0x1e2   : > { %s2946_s5 = sshll.u32 %s3208_s4, 4 }
 0x1e3   : > { %s1241_s8 = ssub.s32 32, %s2946_s5 }
 0x1e4   : > { %1242 = vsyncadd %s1228_s30, %s1241_s8  ;;  %p1369_p1 = scmp.ne.s32.totalorder %s2946_s5, 0  ;;  %s1379_s14 = sshll.u32 %s1661_s13, 5 }
 0x1e5   : > { %s2956_s23 = scalar_lea.hbm %s2999_s2, %s1379_s14  ;;  %s1247_s27 = sshll.u32 %s217_s25, 4  ;;  %s1248_s27 = int_to_ptr.vmem [resolvable:$true] %s1247_s27 }
 0x1e6   : > { %s1545_s19 = scalar_lea.vmem %s1248_s27, %s2946_s5  ;;  %s1624_s6 = smov [#allocation7]  }
 0x1e7   : > { %p1546_p3 = scmp.ne.s32.totalorder %s1248_s27, %s1545_s19  ;;  %s1549_s26 = sshll.u32 %s1624_s6, 4  ;;  %s1550_s26 = int_to_ptr.vmem [resolvable:$false] %s1549_s26 }
 0x1e8   : > { %s1551_s28 = scalar_lea.vmem %s1550_s26, 64  ;;  %p1552_p9 = scmp.lt.s32.totalorder %s1248_s27, %s1550_s26 }
 0x1e9   : > { %p1547_p4 = pnand %p1546_p3, %p1369_p1  ;;  %p1553_p10 = scmp.lt.s32.totalorder %s1551_s28, %s1545_s19 }
 0x1eb   : > { %p1548_p7 = pneg %p1547_p4  ;;  %p1554_p13 = por %p1553_p10, %p1552_p9 }
 0x1ed   : > { %p1555_p8 = pnand %p1554_p13, %p1548_p7 }
 0x1ef   : > { %1558 = shalt.err (!%p1555_p8)
}
 0x1f0   : > { %s1559_s13 = scalar_lea.hbm %s2956_s23, %s2946_s5  ;;  %s1563_s20 = scalar_lea.hbm %s2999_s2, 144 }
 0x1f1   : > { %p1560_p11 = scmp.ne.s32.totalorder %s2956_s23, %s1559_s13  ;;  %p1564_p0 = scmp.lt.u32.totalorder %s2956_s23, %s2999_s2 }
 0x1f2   : > { %p1565_p6 = scmp.lt.u32.totalorder %s1563_s20, %s1559_s13  ;;  %p1567_p3 = scmp.lt.u32.totalorder %s1559_s13, %s2956_s23 }
 0x1f3   : > { %p1561_p2 = pnand %p1560_p11, %p1369_p1 }
 0x1f4   : > { %p1566_p5 = por %p1565_p6, %p1564_p0 }
 0x1f5   : > { %p1562_p12 = pneg %p1561_p2 }
 0x1f6   : > { %p1568_p4 = por %p1567_p3, %p1566_p5 }
 0x1f8   : > { %p1569_p7 = pnand %p1568_p4, %p1562_p12 }
 0x1fa   : > { %1572 = shalt.err (!%p1569_p7)
}
 0x1fb   : > { %1250 = dma.vmem_to_hbm [thread:$0]  (%p1369_p1), %s1248_s27, %s2946_s5, %s2956_s23, %s1228_s30  }
 0x1fc PF: > { %p1387_p9 = scmp.ge.s32.totalorder %s1615_s12, 2  ;;  %s1259_s3 = sand.u32 1, %s1603_s9  }
 0x1fd   : > { %p3198_p10 = scmp.ne.s32.totalorder %s3055_s22, 0  ;;  %s1260_s4 = scalar_lea.sflag [#allocation4], %s1259_s3 }
 0x1ff   : > { %p1384_p13 = pnand %p1387_p9, %p3198_p10 }
 0x201   : > { %1598 = dma.done.wait (!%p1384_p13), %s1260_s4, 32  }
 0x202   : > { %1600 = vsyncadd (!%p1384_p13), %s1260_s4, 4294967264  ;;  %p18_p8 = scmp.ge.s32.totalorder %s1665_s15, 7   ;;  %s3199_s9 = smov %s1607_s10 }
 0x203   : > { %s3200_s10 = smov %s1611_s11  ;;  %s3201_s11 = smov %s1677_s18 }
 0x204   : > { %s3202_s12 = smov %s1665_s15  ;;  %20 = sbr.rel (!%p18_p8) target bundleno = 7 (0x7), region = 86 }
 0x20b   :  { %1265 = vsyncpa [#allocation3], 1 }
 0x20c   :  { %1267 = vsyncpa [#allocation3 + $0x1], 1 }
 0x20d   :  { %1268 = vsyncpa [#allocation6], 1 }
 0x20e   :  { %1270 = vsyncpa [#allocation6 + $0x1], 1 }
 0x20f   :  { %1271 = vsyncpa [#allocation4], 1 }
 0x210   :  { %1273 = vsyncpa [#allocation4 + $0x1], 1 }

</bundles_post_ra>
